<compile_context>
chip_gen: v7x
topology: tpu7x:2x2x1
jax: 0.10.0
libtpu: 0.0.40
codegen_flags: <defaults>
</compile_context>

<pallas_src>
import math
import functools

import jax
import jax.numpy as jnp
from jax.experimental import pallas as pl
from jax.experimental.pallas import tpu as pltpu


DEFAULT_ROWS_PER_BLOCK = 32  # sweep 32-64 per chip; must stay a multiple of 8


def _round_up(x: int, m: int) -> int:
    return ((x + m - 1) // m) * m


# ---------------------------------------------------------------------------
# Pallas kernel
# ---------------------------------------------------------------------------
def _token_embedding_kernel(
    tok_ref,      # SMEM  (n_tokens,) int32   -- scalar-prefetch token ids
    table_ref,    # HBM   (vocab, E)          -- memory_space=pl.ANY (no auto-DMA)
    o_ref,        # VMEM  (rows_per_block, E) -- output tile (auto-pipelined)
    rows_vmem,    # VMEM  (rows_per_block, E) -- contiguous gather landing pad
    sem,          # DMA semaphore shared by all equal-sized row copies
    *,
    scale: float,
    rows_per_block: int,
    n_tokens: int,
    vocab_size: int,
):
    step = pl.program_id(0)
    base = step * rows_per_block

    # Issue all row-gather DMAs for this tile; they run concurrently, which
    # amortizes per-DMA latency across rows_per_block small transfers.
    for r in range(rows_per_block):
        idx = jnp.minimum(base + r, n_tokens - 1)          # ragged-tail clamp
        tok = jnp.clip(tok_ref[idx], 0, vocab_size - 1)    # OOB-id safety clamp
        pltpu.make_async_copy(table_ref.at[tok], rows_vmem.at[r], sem).start()

    # Wait for all copies.  All copies are the same size and share `sem`, so
    # rows_per_block waits exactly consume rows_per_block completions.
    for r in range(rows_per_block):
        pltpu.make_async_copy(table_ref.at[0], rows_vmem.at[r], sem).wait()

    # Single dense, lane-/sublane-dense scale + store in the table's dtype
    # (no f32 round trip; v6e/v7x have bf16 VALU, f32 path unchanged).
    o_ref[...] = (rows_vmem[...] * scale).astype(o_ref.dtype)


# ---------------------------------------------------------------------------
# Wrapper
# ---------------------------------------------------------------------------
def token_embedding_forward(
    tokens: jax.Array,            # integer ids, any shape
    embedding_table: jax.Array,   # (vocab_size, emb_size)
    *,
    rows_per_block: int = DEFAULT_ROWS_PER_BLOCK,
) -> jax.Array:
    """Pallas equivalent of TokenEmbedding.forward: table[tokens] * sqrt(emb_size)."""
    vocab_size, emb_size = embedding_table.shape
    scale = math.sqrt(float(emb_size))
    out_dtype = embedding_table.dtype

    # tokens.long() in the reference; int32 indexes any realistic vocab.
    tok_flat = tokens.reshape(-1).astype(jnp.int32)
    n = int(tok_flat.shape[0])
    if n == 0:
        return jnp.zeros(tokens.shape + (emb_size,), out_dtype)

    # Tile rows: multiple of 8 (sublane-dense), capped so tiny inputs don't
    # over-gather.  Larger tiles amortize the ~0.35 us per-grid-step overhead.
    rows = max(8, min(_round_up(rows_per_block, 8), _round_up(n, 8)))
    grid = pl.cdiv(n, rows)

    itemsize = jnp.dtype(out_dtype).itemsize
    cost = pl.CostEstimate(
        flops=n * emb_size,                                   # one mul per element
        transcendentals=0,
        bytes_accessed=n * emb_size * itemsize * 2 + n * 4,   # gather + store + ids
    )

    kernel = functools.partial(
        _token_embedding_kernel,
        scale=scale,
        rows_per_block=rows,
        n_tokens=n,
        vocab_size=vocab_size,
    )

    out = pl.pallas_call(
        kernel,
        out_shape=jax.ShapeDtypeStruct((n, emb_size), out_dtype),
        grid_spec=pltpu.PrefetchScalarGridSpec(
            num_scalar_prefetch=1,              # token ids -> SMEM
            grid=(grid,),
            in_specs=[pl.BlockSpec(memory_space=pl.ANY)],   # table stays in HBM
            out_specs=pl.BlockSpec((rows, emb_size), lambda i, tok: (i, 0)),
            scratch_shapes=[
                pltpu.VMEM((rows, emb_size), out_dtype),    # contiguous gather tile
                pltpu.SemaphoreType.DMA,
            ],
        ),
        compiler_params=pltpu.CompilerParams(
            dimension_semantics=("parallel",),  # v7x: split grid across 2 TCs
        ),
        cost_estimate=cost,
    )(tok_flat, embedding_table)

    # VMEM footprint is tiny (scratch + pipelined output tile), so the default
    # scoped-VMEM limits are fine on v5e/v6e/v7x even at rows_per_block=64.
    return out.reshape(tokens.shape + (emb_size,))


# ---------------------------------------------------------------------------
# Demo / self-test
# ---------------------------------------------------------------------------
if __name__ == "__main__":
    VOCAB, EMB = 64, 128          # emb_size multiple of 128 keeps stores lane-dense
    SEQ, BATCH = 8, 2

    key = jax.random.PRNGKey(0)
    k_tok, k_emb, k_tok2, k_tok3 = jax.random.split(key, 4)

    table = jax.random.normal(k_emb, (VOCAB, EMB), dtype=jnp.float32)

    # (seq, batch) token matrix.
    tokens = jax.random.randint(k_tok, (SEQ, BATCH), 0, VOCAB, dtype=jnp.int32)
    out = jax.block_until_ready(token_embedding_forward(tokens, table))
    ref = table[tokens] * math.sqrt(EMB)
    assert out.shape == (SEQ, BATCH, EMB)
    assert jnp.allclose(out, ref, atol=1e-6, rtol=1e-6), "mismatch vs reference"

    # Ragged token count (partial trailing output block, no pad/slice copy).
    tokens2 = jax.random.randint(k_tok2, (3,), 0, VOCAB, dtype=jnp.int32)
    out2 = jax.block_until_ready(token_embedding_forward(tokens2, table))
    ref2 = table[tokens2] * math.sqrt(EMB)
    assert out2.shape == (3, EMB)
    assert jnp.allclose(out2, ref2, atol=1e-6, rtol=1e-6), "mismatch (ragged)"

    # Multi-step grid with a ragged tail (grid > 1, clamped tail indices).
    tokens3 = jax.random.randint(k_tok3, (7, 11), 0, VOCAB, dtype=jnp.int32)
    out3 = jax.block_until_ready(
        token_embedding_forward(tokens3, table, rows_per_block=32)
    )
    ref3 = table[tokens3] * math.sqrt(EMB)
    assert out3.shape == (7, 11, EMB)
    assert jnp.allclose(out3, ref3, atol=1e-6, rtol=1e-6), "mismatch (multi-step)"

    print("KERNEL_OK")
</pallas_src>

<mosaic_0001>
module attributes {stable_mosaic.version = 11 : i64} {
  func.func @_token_embedding_kernel(%arg0: i32, %arg1: memref<16xi32, #tpu.memory_space<smem>>, %arg2: memref<64x128xf32, #tpu.memory_space<any>>, %arg3: memref<16x128xf32, #tpu.memory_space<vmem>>, %arg4: memref<16x128xf32, #tpu.memory_space<vmem>>, %arg5: memref<!tpu.dma_semaphore, #tpu.memory_space<semaphore_mem>>) attributes {dimension_semantics = [#tpu.dimension_semantics<parallel>], iteration_bounds = array<i64: 1>, scalar_prefetch = 1 : i64, scratch_operands = 2 : i64, tpu.core_type = #tpu.core_type<tc>, window_params = [{}, {transform_indices = @transform_1, window_bounds = array<i64: 16, 128>}]} {
    %c16_i32 = arith.constant 16 : i32
    %0 = arith.muli %arg0, %c16_i32 : i32
    %c0_i32 = arith.constant 0 : i32
    %1 = arith.addi %0, %c0_i32 : i32
    %c15_i32 = arith.constant 15 : i32
    %2 = arith.minsi %1, %c15_i32 : i32
    %3 = arith.index_cast %2 : i32 to index
    %4 = memref.load %arg1[%3] : memref<16xi32, #tpu.memory_space<smem>>
    %c0_i32_0 = arith.constant 0 : i32
    %c63_i32 = arith.constant 63 : i32
    %5 = arith.maxsi %c0_i32_0, %4 : i32
    %6 = arith.minsi %c63_i32, %5 : i32
    %c0_i32_1 = arith.constant 0 : i32
    %c0_i32_2 = arith.constant 0 : i32
    %7 = tpu.memref_slice %arg2[%6, %c0_i32_2] : memref<64x128xf32, #tpu.memory_space<any>> -> memref<1x128xf32, #tpu.memory_space<any>>
    %8 = tpu.memref_squeeze %7 : memref<1x128xf32, #tpu.memory_space<any>> -> memref<128xf32, #tpu.memory_space<any>>
    %c0_i32_3 = arith.constant 0 : i32
    %9 = tpu.memref_slice %arg4[%c0_i32_1, %c0_i32_3] : memref<16x128xf32, #tpu.memory_space<vmem>> -> memref<1x128xf32, #tpu.memory_space<vmem>>
    %10 = tpu.memref_squeeze %9 : memref<1x128xf32, #tpu.memory_space<vmem>> -> memref<128xf32, #tpu.memory_space<vmem>>
    tpu.enqueue_dma source(%8 : memref<128xf32, #tpu.memory_space<any>>) target(%10 : memref<128xf32, #tpu.memory_space<vmem>>) target_semaphore(%arg5 : memref<!tpu.dma_semaphore, #tpu.memory_space<semaphore_mem>>)
    %c1_i32 = arith.constant 1 : i32
    %11 = arith.addi %0, %c1_i32 : i32
    %c15_i32_4 = arith.constant 15 : i32
    %12 = arith.minsi %11, %c15_i32_4 : i32
    %13 = arith.index_cast %12 : i32 to index
    %14 = memref.load %arg1[%13] : memref<16xi32, #tpu.memory_space<smem>>
    %c0_i32_5 = arith.constant 0 : i32
    %c63_i32_6 = arith.constant 63 : i32
    %15 = arith.maxsi %c0_i32_5, %14 : i32
    %16 = arith.minsi %c63_i32_6, %15 : i32
    %c1_i32_7 = arith.constant 1 : i32
    %c0_i32_8 = arith.constant 0 : i32
    %17 = tpu.memref_slice %arg2[%16, %c0_i32_8] : memref<64x128xf32, #tpu.memory_space<any>> -> memref<1x128xf32, #tpu.memory_space<any>>
    %18 = tpu.memref_squeeze %17 : memref<1x128xf32, #tpu.memory_space<any>> -> memref<128xf32, #tpu.memory_space<any>>
    %c0_i32_9 = arith.constant 0 : i32
    %19 = tpu.memref_slice %arg4[%c1_i32_7, %c0_i32_9] : memref<16x128xf32, #tpu.memory_space<vmem>> -> memref<1x128xf32, #tpu.memory_space<vmem>>
    %20 = tpu.memref_squeeze %19 : memref<1x128xf32, #tpu.memory_space<vmem>> -> memref<128xf32, #tpu.memory_space<vmem>>
    tpu.enqueue_dma source(%18 : memref<128xf32, #tpu.memory_space<any>>) target(%20 : memref<128xf32, #tpu.memory_space<vmem>>) target_semaphore(%arg5 : memref<!tpu.dma_semaphore, #tpu.memory_space<semaphore_mem>>)
    %c2_i32 = arith.constant 2 : i32
    %21 = arith.addi %0, %c2_i32 : i32
    %c15_i32_10 = arith.constant 15 : i32
    %22 = arith.minsi %21, %c15_i32_10 : i32
    %23 = arith.index_cast %22 : i32 to index
    %24 = memref.load %arg1[%23] : memref<16xi32, #tpu.memory_space<smem>>
    %c0_i32_11 = arith.constant 0 : i32
    %c63_i32_12 = arith.constant 63 : i32
    %25 = arith.maxsi %c0_i32_11, %24 : i32
    %26 = arith.minsi %c63_i32_12, %25 : i32
    %c2_i32_13 = arith.constant 2 : i32
    %c0_i32_14 = arith.constant 0 : i32
    %27 = tpu.memref_slice %arg2[%26, %c0_i32_14] : memref<64x128xf32, #tpu.memory_space<any>> -> memref<1x128xf32, #tpu.memory_space<any>>
    %28 = tpu.memref_squeeze %27 : memref<1x128xf32, #tpu.memory_space<any>> -> memref<128xf32, #tpu.memory_space<any>>
    %c0_i32_15 = arith.constant 0 : i32
    %29 = tpu.memref_slice %arg4[%c2_i32_13, %c0_i32_15] : memref<16x128xf32, #tpu.memory_space<vmem>> -> memref<1x128xf32, #tpu.memory_space<vmem>>
    %30 = tpu.memref_squeeze %29 : memref<1x128xf32, #tpu.memory_space<vmem>> -> memref<128xf32, #tpu.memory_space<vmem>>
    tpu.enqueue_dma source(%28 : memref<128xf32, #tpu.memory_space<any>>) target(%30 : memref<128xf32, #tpu.memory_space<vmem>>) target_semaphore(%arg5 : memref<!tpu.dma_semaphore, #tpu.memory_space<semaphore_mem>>)
    %c3_i32 = arith.constant 3 : i32
    %31 = arith.addi %0, %c3_i32 : i32
    %c15_i32_16 = arith.constant 15 : i32
    %32 = arith.minsi %31, %c15_i32_16 : i32
    %33 = arith.index_cast %32 : i32 to index
    %34 = memref.load %arg1[%33] : memref<16xi32, #tpu.memory_space<smem>>
    %c0_i32_17 = arith.constant 0 : i32
    %c63_i32_18 = arith.constant 63 : i32
    %35 = arith.maxsi %c0_i32_17, %34 : i32
    %36 = arith.minsi %c63_i32_18, %35 : i32
    %c3_i32_19 = arith.constant 3 : i32
    %c0_i32_20 = arith.constant 0 : i32
    %37 = tpu.memref_slice %arg2[%36, %c0_i32_20] : memref<64x128xf32, #tpu.memory_space<any>> -> memref<1x128xf32, #tpu.memory_space<any>>
    %38 = tpu.memref_squeeze %37 : memref<1x128xf32, #tpu.memory_space<any>> -> memref<128xf32, #tpu.memory_space<any>>
    %c0_i32_21 = arith.constant 0 : i32
    %39 = tpu.memref_slice %arg4[%c3_i32_19, %c0_i32_21] : memref<16x128xf32, #tpu.memory_space<vmem>> -> memref<1x128xf32, #tpu.memory_space<vmem>>
    %40 = tpu.memref_squeeze %39 : memref<1x128xf32, #tpu.memory_space<vmem>> -> memref<128xf32, #tpu.memory_space<vmem>>
    tpu.enqueue_dma source(%38 : memref<128xf32, #tpu.memory_space<any>>) target(%40 : memref<128xf32, #tpu.memory_space<vmem>>) target_semaphore(%arg5 : memref<!tpu.dma_semaphore, #tpu.memory_space<semaphore_mem>>)
    %c4_i32 = arith.constant 4 : i32
    %41 = arith.addi %0, %c4_i32 : i32
    %c15_i32_22 = arith.constant 15 : i32
    %42 = arith.minsi %41, %c15_i32_22 : i32
    %43 = arith.index_cast %42 : i32 to index
    %44 = memref.load %arg1[%43] : memref<16xi32, #tpu.memory_space<smem>>
    %c0_i32_23 = arith.constant 0 : i32
    %c63_i32_24 = arith.constant 63 : i32
    %45 = arith.maxsi %c0_i32_23, %44 : i32
    %46 = arith.minsi %c63_i32_24, %45 : i32
    %c4_i32_25 = arith.constant 4 : i32
    %c0_i32_26 = arith.constant 0 : i32
    %47 = tpu.memref_slice %arg2[%46, %c0_i32_26] : memref<64x128xf32, #tpu.memory_space<any>> -> memref<1x128xf32, #tpu.memory_space<any>>
    %48 = tpu.memref_squeeze %47 : memref<1x128xf32, #tpu.memory_space<any>> -> memref<128xf32, #tpu.memory_space<any>>
    %c0_i32_27 = arith.constant 0 : i32
    %49 = tpu.memref_slice %arg4[%c4_i32_25, %c0_i32_27] : memref<16x128xf32, #tpu.memory_space<vmem>> -> memref<1x128xf32, #tpu.memory_space<vmem>>
    %50 = tpu.memref_squeeze %49 : memref<1x128xf32, #tpu.memory_space<vmem>> -> memref<128xf32, #tpu.memory_space<vmem>>
    tpu.enqueue_dma source(%48 : memref<128xf32, #tpu.memory_space<any>>) target(%50 : memref<128xf32, #tpu.memory_space<vmem>>) target_semaphore(%arg5 : memref<!tpu.dma_semaphore, #tpu.memory_space<semaphore_mem>>)
    %c5_i32 = arith.constant 5 : i32
    %51 = arith.addi %0, %c5_i32 : i32
    %c15_i32_28 = arith.constant 15 : i32
    %52 = arith.minsi %51, %c15_i32_28 : i32
    %53 = arith.index_cast %52 : i32 to index
    %54 = memref.load %arg1[%53] : memref<16xi32, #tpu.memory_space<smem>>
    %c0_i32_29 = arith.constant 0 : i32
    %c63_i32_30 = arith.constant 63 : i32
    %55 = arith.maxsi %c0_i32_29, %54 : i32
    %56 = arith.minsi %c63_i32_30, %55 : i32
    %c5_i32_31 = arith.constant 5 : i32
    %c0_i32_32 = arith.constant 0 : i32
    %57 = tpu.memref_slice %arg2[%56, %c0_i32_32] : memref<64x128xf32, #tpu.memory_space<any>> -> memref<1x128xf32, #tpu.memory_space<any>>
    %58 = tpu.memref_squeeze %57 : memref<1x128xf32, #tpu.memory_space<any>> -> memref<128xf32, #tpu.memory_space<any>>
    %c0_i32_33 = arith.constant 0 : i32
    %59 = tpu.memref_slice %arg4[%c5_i32_31, %c0_i32_33] : memref<16x128xf32, #tpu.memory_space<vmem>> -> memref<1x128xf32, #tpu.memory_space<vmem>>
    %60 = tpu.memref_squeeze %59 : memref<1x128xf32, #tpu.memory_space<vmem>> -> memref<128xf32, #tpu.memory_space<vmem>>
    tpu.enqueue_dma source(%58 : memref<128xf32, #tpu.memory_space<any>>) target(%60 : memref<128xf32, #tpu.memory_space<vmem>>) target_semaphore(%arg5 : memref<!tpu.dma_semaphore, #tpu.memory_space<semaphore_mem>>)
    %c6_i32 = arith.constant 6 : i32
    %61 = arith.addi %0, %c6_i32 : i32
    %c15_i32_34 = arith.constant 15 : i32
    %62 = arith.minsi %61, %c15_i32_34 : i32
    %63 = arith.index_cast %62 : i32 to index
    %64 = memref.load %arg1[%63] : memref<16xi32, #tpu.memory_space<smem>>
    %c0_i32_35 = arith.constant 0 : i32
    %c63_i32_36 = arith.constant 63 : i32
    %65 = arith.maxsi %c0_i32_35, %64 : i32
    %66 = arith.minsi %c63_i32_36, %65 : i32
    %c6_i32_37 = arith.constant 6 : i32
    %c0_i32_38 = arith.constant 0 : i32
    %67 = tpu.memref_slice %arg2[%66, %c0_i32_38] : memref<64x128xf32, #tpu.memory_space<any>> -> memref<1x128xf32, #tpu.memory_space<any>>
    %68 = tpu.memref_squeeze %67 : memref<1x128xf32, #tpu.memory_space<any>> -> memref<128xf32, #tpu.memory_space<any>>
    %c0_i32_39 = arith.constant 0 : i32
    %69 = tpu.memref_slice %arg4[%c6_i32_37, %c0_i32_39] : memref<16x128xf32, #tpu.memory_space<vmem>> -> memref<1x128xf32, #tpu.memory_space<vmem>>
    %70 = tpu.memref_squeeze %69 : memref<1x128xf32, #tpu.memory_space<vmem>> -> memref<128xf32, #tpu.memory_space<vmem>>
    tpu.enqueue_dma source(%68 : memref<128xf32, #tpu.memory_space<any>>) target(%70 : memref<128xf32, #tpu.memory_space<vmem>>) target_semaphore(%arg5 : memref<!tpu.dma_semaphore, #tpu.memory_space<semaphore_mem>>)
    %c7_i32 = arith.constant 7 : i32
    %71 = arith.addi %0, %c7_i32 : i32
    %c15_i32_40 = arith.constant 15 : i32
    %72 = arith.minsi %71, %c15_i32_40 : i32
    %73 = arith.index_cast %72 : i32 to index
    %74 = memref.load %arg1[%73] : memref<16xi32, #tpu.memory_space<smem>>
    %c0_i32_41 = arith.constant 0 : i32
    %c63_i32_42 = arith.constant 63 : i32
    %75 = arith.maxsi %c0_i32_41, %74 : i32
    %76 = arith.minsi %c63_i32_42, %75 : i32
    %c7_i32_43 = arith.constant 7 : i32
    %c0_i32_44 = arith.constant 0 : i32
    %77 = tpu.memref_slice %arg2[%76, %c0_i32_44] : memref<64x128xf32, #tpu.memory_space<any>> -> memref<1x128xf32, #tpu.memory_space<any>>
    %78 = tpu.memref_squeeze %77 : memref<1x128xf32, #tpu.memory_space<any>> -> memref<128xf32, #tpu.memory_space<any>>
    %c0_i32_45 = arith.constant 0 : i32
    %79 = tpu.memref_slice %arg4[%c7_i32_43, %c0_i32_45] : memref<16x128xf32, #tpu.memory_space<vmem>> -> memref<1x128xf32, #tpu.memory_space<vmem>>
    %80 = tpu.memref_squeeze %79 : memref<1x128xf32, #tpu.memory_space<vmem>> -> memref<128xf32, #tpu.memory_space<vmem>>
    tpu.enqueue_dma source(%78 : memref<128xf32, #tpu.memory_space<any>>) target(%80 : memref<128xf32, #tpu.memory_space<vmem>>) target_semaphore(%arg5 : memref<!tpu.dma_semaphore, #tpu.memory_space<semaphore_mem>>)
    %c8_i32 = arith.constant 8 : i32
    %81 = arith.addi %0, %c8_i32 : i32
    %c15_i32_46 = arith.constant 15 : i32
    %82 = arith.minsi %81, %c15_i32_46 : i32
    %83 = arith.index_cast %82 : i32 to index
    %84 = memref.load %arg1[%83] : memref<16xi32, #tpu.memory_space<smem>>
    %c0_i32_47 = arith.constant 0 : i32
    %c63_i32_48 = arith.constant 63 : i32
    %85 = arith.maxsi %c0_i32_47, %84 : i32
    %86 = arith.minsi %c63_i32_48, %85 : i32
    %c8_i32_49 = arith.constant 8 : i32
    %c0_i32_50 = arith.constant 0 : i32
    %87 = tpu.memref_slice %arg2[%86, %c0_i32_50] : memref<64x128xf32, #tpu.memory_space<any>> -> memref<1x128xf32, #tpu.memory_space<any>>
    %88 = tpu.memref_squeeze %87 : memref<1x128xf32, #tpu.memory_space<any>> -> memref<128xf32, #tpu.memory_space<any>>
    %c0_i32_51 = arith.constant 0 : i32
    %89 = tpu.memref_slice %arg4[%c8_i32_49, %c0_i32_51] : memref<16x128xf32, #tpu.memory_space<vmem>> -> memref<1x128xf32, #tpu.memory_space<vmem>>
    %90 = tpu.memref_squeeze %89 : memref<1x128xf32, #tpu.memory_space<vmem>> -> memref<128xf32, #tpu.memory_space<vmem>>
    tpu.enqueue_dma source(%88 : memref<128xf32, #tpu.memory_space<any>>) target(%90 : memref<128xf32, #tpu.memory_space<vmem>>) target_semaphore(%arg5 : memref<!tpu.dma_semaphore, #tpu.memory_space<semaphore_mem>>)
    %c9_i32 = arith.constant 9 : i32
    %91 = arith.addi %0, %c9_i32 : i32
    %c15_i32_52 = arith.constant 15 : i32
    %92 = arith.minsi %91, %c15_i32_52 : i32
    %93 = arith.index_cast %92 : i32 to index
    %94 = memref.load %arg1[%93] : memref<16xi32, #tpu.memory_space<smem>>
    %c0_i32_53 = arith.constant 0 : i32
    %c63_i32_54 = arith.constant 63 : i32
    %95 = arith.maxsi %c0_i32_53, %94 : i32
    %96 = arith.minsi %c63_i32_54, %95 : i32
    %c9_i32_55 = arith.constant 9 : i32
    %c0_i32_56 = arith.constant 0 : i32
    %97 = tpu.memref_slice %arg2[%96, %c0_i32_56] : memref<64x128xf32, #tpu.memory_space<any>> -> memref<1x128xf32, #tpu.memory_space<any>>
    %98 = tpu.memref_squeeze %97 : memref<1x128xf32, #tpu.memory_space<any>> -> memref<128xf32, #tpu.memory_space<any>>
    %c0_i32_57 = arith.constant 0 : i32
    %99 = tpu.memref_slice %arg4[%c9_i32_55, %c0_i32_57] : memref<16x128xf32, #tpu.memory_space<vmem>> -> memref<1x128xf32, #tpu.memory_space<vmem>>
    %100 = tpu.memref_squeeze %99 : memref<1x128xf32, #tpu.memory_space<vmem>> -> memref<128xf32, #tpu.memory_space<vmem>>
    tpu.enqueue_dma source(%98 : memref<128xf32, #tpu.memory_space<any>>) target(%100 : memref<128xf32, #tpu.memory_space<vmem>>) target_semaphore(%arg5 : memref<!tpu.dma_semaphore, #tpu.memory_space<semaphore_mem>>)
    %c10_i32 = arith.constant 10 : i32
    %101 = arith.addi %0, %c10_i32 : i32
    %c15_i32_58 = arith.constant 15 : i32
    %102 = arith.minsi %101, %c15_i32_58 : i32
    %103 = arith.index_cast %102 : i32 to index
    %104 = memref.load %arg1[%103] : memref<16xi32, #tpu.memory_space<smem>>
    %c0_i32_59 = arith.constant 0 : i32
    %c63_i32_60 = arith.constant 63 : i32
    %105 = arith.maxsi %c0_i32_59, %104 : i32
    %106 = arith.minsi %c63_i32_60, %105 : i32
    %c10_i32_61 = arith.constant 10 : i32
    %c0_i32_62 = arith.constant 0 : i32
    %107 = tpu.memref_slice %arg2[%106, %c0_i32_62] : memref<64x128xf32, #tpu.memory_space<any>> -> memref<1x128xf32, #tpu.memory_space<any>>
    %108 = tpu.memref_squeeze %107 : memref<1x128xf32, #tpu.memory_space<any>> -> memref<128xf32, #tpu.memory_space<any>>
    %c0_i32_63 = arith.constant 0 : i32
    %109 = tpu.memref_slice %arg4[%c10_i32_61, %c0_i32_63] : memref<16x128xf32, #tpu.memory_space<vmem>> -> memref<1x128xf32, #tpu.memory_space<vmem>>
    %110 = tpu.memref_squeeze %109 : memref<1x128xf32, #tpu.memory_space<vmem>> -> memref<128xf32, #tpu.memory_space<vmem>>
    tpu.enqueue_dma source(%108 : memref<128xf32, #tpu.memory_space<any>>) target(%110 : memref<128xf32, #tpu.memory_space<vmem>>) target_semaphore(%arg5 : memref<!tpu.dma_semaphore, #tpu.memory_space<semaphore_mem>>)
    %c11_i32 = arith.constant 11 : i32
    %111 = arith.addi %0, %c11_i32 : i32
    %c15_i32_64 = arith.constant 15 : i32
    %112 = arith.minsi %111, %c15_i32_64 : i32
    %113 = arith.index_cast %112 : i32 to index
    %114 = memref.load %arg1[%113] : memref<16xi32, #tpu.memory_space<smem>>
    %c0_i32_65 = arith.constant 0 : i32
    %c63_i32_66 = arith.constant 63 : i32
    %115 = arith.maxsi %c0_i32_65, %114 : i32
    %116 = arith.minsi %c63_i32_66, %115 : i32
    %c11_i32_67 = arith.constant 11 : i32
    %c0_i32_68 = arith.constant 0 : i32
    %117 = tpu.memref_slice %arg2[%116, %c0_i32_68] : memref<64x128xf32, #tpu.memory_space<any>> -> memref<1x128xf32, #tpu.memory_space<any>>
    %118 = tpu.memref_squeeze %117 : memref<1x128xf32, #tpu.memory_space<any>> -> memref<128xf32, #tpu.memory_space<any>>
    %c0_i32_69 = arith.constant 0 : i32
    %119 = tpu.memref_slice %arg4[%c11_i32_67, %c0_i32_69] : memref<16x128xf32, #tpu.memory_space<vmem>> -> memref<1x128xf32, #tpu.memory_space<vmem>>
    %120 = tpu.memref_squeeze %119 : memref<1x128xf32, #tpu.memory_space<vmem>> -> memref<128xf32, #tpu.memory_space<vmem>>
    tpu.enqueue_dma source(%118 : memref<128xf32, #tpu.memory_space<any>>) target(%120 : memref<128xf32, #tpu.memory_space<vmem>>) target_semaphore(%arg5 : memref<!tpu.dma_semaphore, #tpu.memory_space<semaphore_mem>>)
    %c12_i32 = arith.constant 12 : i32
    %121 = arith.addi %0, %c12_i32 : i32
    %c15_i32_70 = arith.constant 15 : i32
    %122 = arith.minsi %121, %c15_i32_70 : i32
    %123 = arith.index_cast %122 : i32 to index
    %124 = memref.load %arg1[%123] : memref<16xi32, #tpu.memory_space<smem>>
    %c0_i32_71 = arith.constant 0 : i32
    %c63_i32_72 = arith.constant 63 : i32
    %125 = arith.maxsi %c0_i32_71, %124 : i32
    %126 = arith.minsi %c63_i32_72, %125 : i32
    %c12_i32_73 = arith.constant 12 : i32
    %c0_i32_74 = arith.constant 0 : i32
    %127 = tpu.memref_slice %arg2[%126, %c0_i32_74] : memref<64x128xf32, #tpu.memory_space<any>> -> memref<1x128xf32, #tpu.memory_space<any>>
    %128 = tpu.memref_squeeze %127 : memref<1x128xf32, #tpu.memory_space<any>> -> memref<128xf32, #tpu.memory_space<any>>
    %c0_i32_75 = arith.constant 0 : i32
    %129 = tpu.memref_slice %arg4[%c12_i32_73, %c0_i32_75] : memref<16x128xf32, #tpu.memory_space<vmem>> -> memref<1x128xf32, #tpu.memory_space<vmem>>
    %130 = tpu.memref_squeeze %129 : memref<1x128xf32, #tpu.memory_space<vmem>> -> memref<128xf32, #tpu.memory_space<vmem>>
    tpu.enqueue_dma source(%128 : memref<128xf32, #tpu.memory_space<any>>) target(%130 : memref<128xf32, #tpu.memory_space<vmem>>) target_semaphore(%arg5 : memref<!tpu.dma_semaphore, #tpu.memory_space<semaphore_mem>>)
    %c13_i32 = arith.constant 13 : i32
    %131 = arith.addi %0, %c13_i32 : i32
    %c15_i32_76 = arith.constant 15 : i32
    %132 = arith.minsi %131, %c15_i32_76 : i32
    %133 = arith.index_cast %132 : i32 to index
    %134 = memref.load %arg1[%133] : memref<16xi32, #tpu.memory_space<smem>>
    %c0_i32_77 = arith.constant 0 : i32
    %c63_i32_78 = arith.constant 63 : i32
    %135 = arith.maxsi %c0_i32_77, %134 : i32
    %136 = arith.minsi %c63_i32_78, %135 : i32
    %c13_i32_79 = arith.constant 13 : i32
    %c0_i32_80 = arith.constant 0 : i32
    %137 = tpu.memref_slice %arg2[%136, %c0_i32_80] : memref<64x128xf32, #tpu.memory_space<any>> -> memref<1x128xf32, #tpu.memory_space<any>>
    %138 = tpu.memref_squeeze %137 : memref<1x128xf32, #tpu.memory_space<any>> -> memref<128xf32, #tpu.memory_space<any>>
    %c0_i32_81 = arith.constant 0 : i32
    %139 = tpu.memref_slice %arg4[%c13_i32_79, %c0_i32_81] : memref<16x128xf32, #tpu.memory_space<vmem>> -> memref<1x128xf32, #tpu.memory_space<vmem>>
    %140 = tpu.memref_squeeze %139 : memref<1x128xf32, #tpu.memory_space<vmem>> -> memref<128xf32, #tpu.memory_space<vmem>>
    tpu.enqueue_dma source(%138 : memref<128xf32, #tpu.memory_space<any>>) target(%140 : memref<128xf32, #tpu.memory_space<vmem>>) target_semaphore(%arg5 : memref<!tpu.dma_semaphore, #tpu.memory_space<semaphore_mem>>)
    %c14_i32 = arith.constant 14 : i32
    %141 = arith.addi %0, %c14_i32 : i32
    %c15_i32_82 = arith.constant 15 : i32
    %142 = arith.minsi %141, %c15_i32_82 : i32
    %143 = arith.index_cast %142 : i32 to index
    %144 = memref.load %arg1[%143] : memref<16xi32, #tpu.memory_space<smem>>
    %c0_i32_83 = arith.constant 0 : i32
    %c63_i32_84 = arith.constant 63 : i32
    %145 = arith.maxsi %c0_i32_83, %144 : i32
    %146 = arith.minsi %c63_i32_84, %145 : i32
    %c14_i32_85 = arith.constant 14 : i32
    %c0_i32_86 = arith.constant 0 : i32
    %147 = tpu.memref_slice %arg2[%146, %c0_i32_86] : memref<64x128xf32, #tpu.memory_space<any>> -> memref<1x128xf32, #tpu.memory_space<any>>
    %148 = tpu.memref_squeeze %147 : memref<1x128xf32, #tpu.memory_space<any>> -> memref<128xf32, #tpu.memory_space<any>>
    %c0_i32_87 = arith.constant 0 : i32
    %149 = tpu.memref_slice %arg4[%c14_i32_85, %c0_i32_87] : memref<16x128xf32, #tpu.memory_space<vmem>> -> memref<1x128xf32, #tpu.memory_space<vmem>>
    %150 = tpu.memref_squeeze %149 : memref<1x128xf32, #tpu.memory_space<vmem>> -> memref<128xf32, #tpu.memory_space<vmem>>
    tpu.enqueue_dma source(%148 : memref<128xf32, #tpu.memory_space<any>>) target(%150 : memref<128xf32, #tpu.memory_space<vmem>>) target_semaphore(%arg5 : memref<!tpu.dma_semaphore, #tpu.memory_space<semaphore_mem>>)
    %c15_i32_88 = arith.constant 15 : i32
    %151 = arith.addi %0, %c15_i32_88 : i32
    %c15_i32_89 = arith.constant 15 : i32
    %152 = arith.minsi %151, %c15_i32_89 : i32
    %153 = arith.index_cast %152 : i32 to index
    %154 = memref.load %arg1[%153] : memref<16xi32, #tpu.memory_space<smem>>
    %c0_i32_90 = arith.constant 0 : i32
    %c63_i32_91 = arith.constant 63 : i32
    %155 = arith.maxsi %c0_i32_90, %154 : i32
    %156 = arith.minsi %c63_i32_91, %155 : i32
    %c15_i32_92 = arith.constant 15 : i32
    %c0_i32_93 = arith.constant 0 : i32
    %157 = tpu.memref_slice %arg2[%156, %c0_i32_93] : memref<64x128xf32, #tpu.memory_space<any>> -> memref<1x128xf32, #tpu.memory_space<any>>
    %158 = tpu.memref_squeeze %157 : memref<1x128xf32, #tpu.memory_space<any>> -> memref<128xf32, #tpu.memory_space<any>>
    %c0_i32_94 = arith.constant 0 : i32
    %159 = tpu.memref_slice %arg4[%c15_i32_92, %c0_i32_94] : memref<16x128xf32, #tpu.memory_space<vmem>> -> memref<1x128xf32, #tpu.memory_space<vmem>>
    %160 = tpu.memref_squeeze %159 : memref<1x128xf32, #tpu.memory_space<vmem>> -> memref<128xf32, #tpu.memory_space<vmem>>
    tpu.enqueue_dma source(%158 : memref<128xf32, #tpu.memory_space<any>>) target(%160 : memref<128xf32, #tpu.memory_space<vmem>>) target_semaphore(%arg5 : memref<!tpu.dma_semaphore, #tpu.memory_space<semaphore_mem>>)
    %c0_i32_95 = arith.constant 0 : i32
    %c0_i32_96 = arith.constant 0 : i32
    %c0_i32_97 = arith.constant 0 : i32
    %161 = tpu.memref_slice %arg2[%c0_i32_95, %c0_i32_97] : memref<64x128xf32, #tpu.memory_space<any>> -> memref<1x128xf32, #tpu.memory_space<any>>
    %162 = tpu.memref_squeeze %161 : memref<1x128xf32, #tpu.memory_space<any>> -> memref<128xf32, #tpu.memory_space<any>>
    %c0_i32_98 = arith.constant 0 : i32
    %163 = tpu.memref_slice %arg4[%c0_i32_96, %c0_i32_98] : memref<16x128xf32, #tpu.memory_space<vmem>> -> memref<1x128xf32, #tpu.memory_space<vmem>>
    %164 = tpu.memref_squeeze %163 : memref<1x128xf32, #tpu.memory_space<vmem>> -> memref<128xf32, #tpu.memory_space<vmem>>
    tpu.wait_dma2 semaphore(%arg5 : memref<!tpu.dma_semaphore, #tpu.memory_space<semaphore_mem>>) src(%162 : memref<128xf32, #tpu.memory_space<any>>) dst(%164 : memref<128xf32, #tpu.memory_space<vmem>>)
    %c0_i32_99 = arith.constant 0 : i32
    %c1_i32_100 = arith.constant 1 : i32
    %c0_i32_101 = arith.constant 0 : i32
    %165 = tpu.memref_slice %arg2[%c0_i32_99, %c0_i32_101] : memref<64x128xf32, #tpu.memory_space<any>> -> memref<1x128xf32, #tpu.memory_space<any>>
    %166 = tpu.memref_squeeze %165 : memref<1x128xf32, #tpu.memory_space<any>> -> memref<128xf32, #tpu.memory_space<any>>
    %c0_i32_102 = arith.constant 0 : i32
    %167 = tpu.memref_slice %arg4[%c1_i32_100, %c0_i32_102] : memref<16x128xf32, #tpu.memory_space<vmem>> -> memref<1x128xf32, #tpu.memory_space<vmem>>
    %168 = tpu.memref_squeeze %167 : memref<1x128xf32, #tpu.memory_space<vmem>> -> memref<128xf32, #tpu.memory_space<vmem>>
    tpu.wait_dma2 semaphore(%arg5 : memref<!tpu.dma_semaphore, #tpu.memory_space<semaphore_mem>>) src(%166 : memref<128xf32, #tpu.memory_space<any>>) dst(%168 : memref<128xf32, #tpu.memory_space<vmem>>)
    %c0_i32_103 = arith.constant 0 : i32
    %c2_i32_104 = arith.constant 2 : i32
    %c0_i32_105 = arith.constant 0 : i32
    %169 = tpu.memref_slice %arg2[%c0_i32_103, %c0_i32_105] : memref<64x128xf32, #tpu.memory_space<any>> -> memref<1x128xf32, #tpu.memory_space<any>>
    %170 = tpu.memref_squeeze %169 : memref<1x128xf32, #tpu.memory_space<any>> -> memref<128xf32, #tpu.memory_space<any>>
    %c0_i32_106 = arith.constant 0 : i32
    %171 = tpu.memref_slice %arg4[%c2_i32_104, %c0_i32_106] : memref<16x128xf32, #tpu.memory_space<vmem>> -> memref<1x128xf32, #tpu.memory_space<vmem>>
    %172 = tpu.memref_squeeze %171 : memref<1x128xf32, #tpu.memory_space<vmem>> -> memref<128xf32, #tpu.memory_space<vmem>>
    tpu.wait_dma2 semaphore(%arg5 : memref<!tpu.dma_semaphore, #tpu.memory_space<semaphore_mem>>) src(%170 : memref<128xf32, #tpu.memory_space<any>>) dst(%172 : memref<128xf32, #tpu.memory_space<vmem>>)
    %c0_i32_107 = arith.constant 0 : i32
    %c3_i32_108 = arith.constant 3 : i32
    %c0_i32_109 = arith.constant 0 : i32
    %173 = tpu.memref_slice %arg2[%c0_i32_107, %c0_i32_109] : memref<64x128xf32, #tpu.memory_space<any>> -> memref<1x128xf32, #tpu.memory_space<any>>
    %174 = tpu.memref_squeeze %173 : memref<1x128xf32, #tpu.memory_space<any>> -> memref<128xf32, #tpu.memory_space<any>>
    %c0_i32_110 = arith.constant 0 : i32
    %175 = tpu.memref_slice %arg4[%c3_i32_108, %c0_i32_110] : memref<16x128xf32, #tpu.memory_space<vmem>> -> memref<1x128xf32, #tpu.memory_space<vmem>>
    %176 = tpu.memref_squeeze %175 : memref<1x128xf32, #tpu.memory_space<vmem>> -> memref<128xf32, #tpu.memory_space<vmem>>
    tpu.wait_dma2 semaphore(%arg5 : memref<!tpu.dma_semaphore, #tpu.memory_space<semaphore_mem>>) src(%174 : memref<128xf32, #tpu.memory_space<any>>) dst(%176 : memref<128xf32, #tpu.memory_space<vmem>>)
    %c0_i32_111 = arith.constant 0 : i32
    %c4_i32_112 = arith.constant 4 : i32
    %c0_i32_113 = arith.constant 0 : i32
    %177 = tpu.memref_slice %arg2[%c0_i32_111, %c0_i32_113] : memref<64x128xf32, #tpu.memory_space<any>> -> memref<1x128xf32, #tpu.memory_space<any>>
    %178 = tpu.memref_squeeze %177 : memref<1x128xf32, #tpu.memory_space<any>> -> memref<128xf32, #tpu.memory_space<any>>
    %c0_i32_114 = arith.constant 0 : i32
    %179 = tpu.memref_slice %arg4[%c4_i32_112, %c0_i32_114] : memref<16x128xf32, #tpu.memory_space<vmem>> -> memref<1x128xf32, #tpu.memory_space<vmem>>
    %180 = tpu.memref_squeeze %179 : memref<1x128xf32, #tpu.memory_space<vmem>> -> memref<128xf32, #tpu.memory_space<vmem>>
    tpu.wait_dma2 semaphore(%arg5 : memref<!tpu.dma_semaphore, #tpu.memory_space<semaphore_mem>>) src(%178 : memref<128xf32, #tpu.memory_space<any>>) dst(%180 : memref<128xf32, #tpu.memory_space<vmem>>)
    %c0_i32_115 = arith.constant 0 : i32
    %c5_i32_116 = arith.constant 5 : i32
    %c0_i32_117 = arith.constant 0 : i32
    %181 = tpu.memref_slice %arg2[%c0_i32_115, %c0_i32_117] : memref<64x128xf32, #tpu.memory_space<any>> -> memref<1x128xf32, #tpu.memory_space<any>>
    %182 = tpu.memref_squeeze %181 : memref<1x128xf32, #tpu.memory_space<any>> -> memref<128xf32, #tpu.memory_space<any>>
    %c0_i32_118 = arith.constant 0 : i32
    %183 = tpu.memref_slice %arg4[%c5_i32_116, %c0_i32_118] : memref<16x128xf32, #tpu.memory_space<vmem>> -> memref<1x128xf32, #tpu.memory_space<vmem>>
    %184 = tpu.memref_squeeze %183 : memref<1x128xf32, #tpu.memory_space<vmem>> -> memref<128xf32, #tpu.memory_space<vmem>>
    tpu.wait_dma2 semaphore(%arg5 : memref<!tpu.dma_semaphore, #tpu.memory_space<semaphore_mem>>) src(%182 : memref<128xf32, #tpu.memory_space<any>>) dst(%184 : memref<128xf32, #tpu.memory_space<vmem>>)
    %c0_i32_119 = arith.constant 0 : i32
    %c6_i32_120 = arith.constant 6 : i32
    %c0_i32_121 = arith.constant 0 : i32
    %185 = tpu.memref_slice %arg2[%c0_i32_119, %c0_i32_121] : memref<64x128xf32, #tpu.memory_space<any>> -> memref<1x128xf32, #tpu.memory_space<any>>
    %186 = tpu.memref_squeeze %185 : memref<1x128xf32, #tpu.memory_space<any>> -> memref<128xf32, #tpu.memory_space<any>>
    %c0_i32_122 = arith.constant 0 : i32
    %187 = tpu.memref_slice %arg4[%c6_i32_120, %c0_i32_122] : memref<16x128xf32, #tpu.memory_space<vmem>> -> memref<1x128xf32, #tpu.memory_space<vmem>>
    %188 = tpu.memref_squeeze %187 : memref<1x128xf32, #tpu.memory_space<vmem>> -> memref<128xf32, #tpu.memory_space<vmem>>
    tpu.wait_dma2 semaphore(%arg5 : memref<!tpu.dma_semaphore, #tpu.memory_space<semaphore_mem>>) src(%186 : memref<128xf32, #tpu.memory_space<any>>) dst(%188 : memref<128xf32, #tpu.memory_space<vmem>>)
    %c0_i32_123 = arith.constant 0 : i32
    %c7_i32_124 = arith.constant 7 : i32
    %c0_i32_125 = arith.constant 0 : i32
    %189 = tpu.memref_slice %arg2[%c0_i32_123, %c0_i32_125] : memref<64x128xf32, #tpu.memory_space<any>> -> memref<1x128xf32, #tpu.memory_space<any>>
    %190 = tpu.memref_squeeze %189 : memref<1x128xf32, #tpu.memory_space<any>> -> memref<128xf32, #tpu.memory_space<any>>
    %c0_i32_126 = arith.constant 0 : i32
    %191 = tpu.memref_slice %arg4[%c7_i32_124, %c0_i32_126] : memref<16x128xf32, #tpu.memory_space<vmem>> -> memref<1x128xf32, #tpu.memory_space<vmem>>
    %192 = tpu.memref_squeeze %191 : memref<1x128xf32, #tpu.memory_space<vmem>> -> memref<128xf32, #tpu.memory_space<vmem>>
    tpu.wait_dma2 semaphore(%arg5 : memref<!tpu.dma_semaphore, #tpu.memory_space<semaphore_mem>>) src(%190 : memref<128xf32, #tpu.memory_space<any>>) dst(%192 : memref<128xf32, #tpu.memory_space<vmem>>)
    %c0_i32_127 = arith.constant 0 : i32
    %c8_i32_128 = arith.constant 8 : i32
    %c0_i32_129 = arith.constant 0 : i32
    %193 = tpu.memref_slice %arg2[%c0_i32_127, %c0_i32_129] : memref<64x128xf32, #tpu.memory_space<any>> -> memref<1x128xf32, #tpu.memory_space<any>>
    %194 = tpu.memref_squeeze %193 : memref<1x128xf32, #tpu.memory_space<any>> -> memref<128xf32, #tpu.memory_space<any>>
    %c0_i32_130 = arith.constant 0 : i32
    %195 = tpu.memref_slice %arg4[%c8_i32_128, %c0_i32_130] : memref<16x128xf32, #tpu.memory_space<vmem>> -> memref<1x128xf32, #tpu.memory_space<vmem>>
    %196 = tpu.memref_squeeze %195 : memref<1x128xf32, #tpu.memory_space<vmem>> -> memref<128xf32, #tpu.memory_space<vmem>>
    tpu.wait_dma2 semaphore(%arg5 : memref<!tpu.dma_semaphore, #tpu.memory_space<semaphore_mem>>) src(%194 : memref<128xf32, #tpu.memory_space<any>>) dst(%196 : memref<128xf32, #tpu.memory_space<vmem>>)
    %c0_i32_131 = arith.constant 0 : i32
    %c9_i32_132 = arith.constant 9 : i32
    %c0_i32_133 = arith.constant 0 : i32
    %197 = tpu.memref_slice %arg2[%c0_i32_131, %c0_i32_133] : memref<64x128xf32, #tpu.memory_space<any>> -> memref<1x128xf32, #tpu.memory_space<any>>
    %198 = tpu.memref_squeeze %197 : memref<1x128xf32, #tpu.memory_space<any>> -> memref<128xf32, #tpu.memory_space<any>>
    %c0_i32_134 = arith.constant 0 : i32
    %199 = tpu.memref_slice %arg4[%c9_i32_132, %c0_i32_134] : memref<16x128xf32, #tpu.memory_space<vmem>> -> memref<1x128xf32, #tpu.memory_space<vmem>>
    %200 = tpu.memref_squeeze %199 : memref<1x128xf32, #tpu.memory_space<vmem>> -> memref<128xf32, #tpu.memory_space<vmem>>
    tpu.wait_dma2 semaphore(%arg5 : memref<!tpu.dma_semaphore, #tpu.memory_space<semaphore_mem>>) src(%198 : memref<128xf32, #tpu.memory_space<any>>) dst(%200 : memref<128xf32, #tpu.memory_space<vmem>>)
    %c0_i32_135 = arith.constant 0 : i32
    %c10_i32_136 = arith.constant 10 : i32
    %c0_i32_137 = arith.constant 0 : i32
    %201 = tpu.memref_slice %arg2[%c0_i32_135, %c0_i32_137] : memref<64x128xf32, #tpu.memory_space<any>> -> memref<1x128xf32, #tpu.memory_space<any>>
    %202 = tpu.memref_squeeze %201 : memref<1x128xf32, #tpu.memory_space<any>> -> memref<128xf32, #tpu.memory_space<any>>
    %c0_i32_138 = arith.constant 0 : i32
    %203 = tpu.memref_slice %arg4[%c10_i32_136, %c0_i32_138] : memref<16x128xf32, #tpu.memory_space<vmem>> -> memref<1x128xf32, #tpu.memory_space<vmem>>
    %204 = tpu.memref_squeeze %203 : memref<1x128xf32, #tpu.memory_space<vmem>> -> memref<128xf32, #tpu.memory_space<vmem>>
    tpu.wait_dma2 semaphore(%arg5 : memref<!tpu.dma_semaphore, #tpu.memory_space<semaphore_mem>>) src(%202 : memref<128xf32, #tpu.memory_space<any>>) dst(%204 : memref<128xf32, #tpu.memory_space<vmem>>)
    %c0_i32_139 = arith.constant 0 : i32
    %c11_i32_140 = arith.constant 11 : i32
    %c0_i32_141 = arith.constant 0 : i32
    %205 = tpu.memref_slice %arg2[%c0_i32_139, %c0_i32_141] : memref<64x128xf32, #tpu.memory_space<any>> -> memref<1x128xf32, #tpu.memory_space<any>>
    %206 = tpu.memref_squeeze %205 : memref<1x128xf32, #tpu.memory_space<any>> -> memref<128xf32, #tpu.memory_space<any>>
    %c0_i32_142 = arith.constant 0 : i32
    %207 = tpu.memref_slice %arg4[%c11_i32_140, %c0_i32_142] : memref<16x128xf32, #tpu.memory_space<vmem>> -> memref<1x128xf32, #tpu.memory_space<vmem>>
    %208 = tpu.memref_squeeze %207 : memref<1x128xf32, #tpu.memory_space<vmem>> -> memref<128xf32, #tpu.memory_space<vmem>>
    tpu.wait_dma2 semaphore(%arg5 : memref<!tpu.dma_semaphore, #tpu.memory_space<semaphore_mem>>) src(%206 : memref<128xf32, #tpu.memory_space<any>>) dst(%208 : memref<128xf32, #tpu.memory_space<vmem>>)
    %c0_i32_143 = arith.constant 0 : i32
    %c12_i32_144 = arith.constant 12 : i32
    %c0_i32_145 = arith.constant 0 : i32
    %209 = tpu.memref_slice %arg2[%c0_i32_143, %c0_i32_145] : memref<64x128xf32, #tpu.memory_space<any>> -> memref<1x128xf32, #tpu.memory_space<any>>
    %210 = tpu.memref_squeeze %209 : memref<1x128xf32, #tpu.memory_space<any>> -> memref<128xf32, #tpu.memory_space<any>>
    %c0_i32_146 = arith.constant 0 : i32
    %211 = tpu.memref_slice %arg4[%c12_i32_144, %c0_i32_146] : memref<16x128xf32, #tpu.memory_space<vmem>> -> memref<1x128xf32, #tpu.memory_space<vmem>>
    %212 = tpu.memref_squeeze %211 : memref<1x128xf32, #tpu.memory_space<vmem>> -> memref<128xf32, #tpu.memory_space<vmem>>
    tpu.wait_dma2 semaphore(%arg5 : memref<!tpu.dma_semaphore, #tpu.memory_space<semaphore_mem>>) src(%210 : memref<128xf32, #tpu.memory_space<any>>) dst(%212 : memref<128xf32, #tpu.memory_space<vmem>>)
    %c0_i32_147 = arith.constant 0 : i32
    %c13_i32_148 = arith.constant 13 : i32
    %c0_i32_149 = arith.constant 0 : i32
    %213 = tpu.memref_slice %arg2[%c0_i32_147, %c0_i32_149] : memref<64x128xf32, #tpu.memory_space<any>> -> memref<1x128xf32, #tpu.memory_space<any>>
    %214 = tpu.memref_squeeze %213 : memref<1x128xf32, #tpu.memory_space<any>> -> memref<128xf32, #tpu.memory_space<any>>
    %c0_i32_150 = arith.constant 0 : i32
    %215 = tpu.memref_slice %arg4[%c13_i32_148, %c0_i32_150] : memref<16x128xf32, #tpu.memory_space<vmem>> -> memref<1x128xf32, #tpu.memory_space<vmem>>
    %216 = tpu.memref_squeeze %215 : memref<1x128xf32, #tpu.memory_space<vmem>> -> memref<128xf32, #tpu.memory_space<vmem>>
    tpu.wait_dma2 semaphore(%arg5 : memref<!tpu.dma_semaphore, #tpu.memory_space<semaphore_mem>>) src(%214 : memref<128xf32, #tpu.memory_space<any>>) dst(%216 : memref<128xf32, #tpu.memory_space<vmem>>)
    %c0_i32_151 = arith.constant 0 : i32
    %c14_i32_152 = arith.constant 14 : i32
    %c0_i32_153 = arith.constant 0 : i32
    %217 = tpu.memref_slice %arg2[%c0_i32_151, %c0_i32_153] : memref<64x128xf32, #tpu.memory_space<any>> -> memref<1x128xf32, #tpu.memory_space<any>>
    %218 = tpu.memref_squeeze %217 : memref<1x128xf32, #tpu.memory_space<any>> -> memref<128xf32, #tpu.memory_space<any>>
    %c0_i32_154 = arith.constant 0 : i32
    %219 = tpu.memref_slice %arg4[%c14_i32_152, %c0_i32_154] : memref<16x128xf32, #tpu.memory_space<vmem>> -> memref<1x128xf32, #tpu.memory_space<vmem>>
    %220 = tpu.memref_squeeze %219 : memref<1x128xf32, #tpu.memory_space<vmem>> -> memref<128xf32, #tpu.memory_space<vmem>>
    tpu.wait_dma2 semaphore(%arg5 : memref<!tpu.dma_semaphore, #tpu.memory_space<semaphore_mem>>) src(%218 : memref<128xf32, #tpu.memory_space<any>>) dst(%220 : memref<128xf32, #tpu.memory_space<vmem>>)
    %c0_i32_155 = arith.constant 0 : i32
    %c15_i32_156 = arith.constant 15 : i32
    %c0_i32_157 = arith.constant 0 : i32
    %221 = tpu.memref_slice %arg2[%c0_i32_155, %c0_i32_157] : memref<64x128xf32, #tpu.memory_space<any>> -> memref<1x128xf32, #tpu.memory_space<any>>
    %222 = tpu.memref_squeeze %221 : memref<1x128xf32, #tpu.memory_space<any>> -> memref<128xf32, #tpu.memory_space<any>>
    %c0_i32_158 = arith.constant 0 : i32
    %223 = tpu.memref_slice %arg4[%c15_i32_156, %c0_i32_158] : memref<16x128xf32, #tpu.memory_space<vmem>> -> memref<1x128xf32, #tpu.memory_space<vmem>>
    %224 = tpu.memref_squeeze %223 : memref<1x128xf32, #tpu.memory_space<vmem>> -> memref<128xf32, #tpu.memory_space<vmem>>
    tpu.wait_dma2 semaphore(%arg5 : memref<!tpu.dma_semaphore, #tpu.memory_space<semaphore_mem>>) src(%222 : memref<128xf32, #tpu.memory_space<any>>) dst(%224 : memref<128xf32, #tpu.memory_space<vmem>>)
    %c0 = arith.constant 0 : index
    %c0_159 = arith.constant 0 : index
    %225 = vector.load %arg4[%c0, %c0_159] : memref<16x128xf32, #tpu.memory_space<vmem>>, vector<16x128xf32>
    %cst = arith.constant 11.3137083 : f32
    %226 = vector.broadcast %cst : f32 to vector<16x128xf32>
    %227 = arith.mulf %225, %226 : vector<16x128xf32>
    %c0_160 = arith.constant 0 : index
    %c0_161 = arith.constant 0 : index
    %228 = vector.load %arg3[%c0_160, %c0_161] : memref<16x128xf32, #tpu.memory_space<vmem>>, vector<16x128xf32>
    tpu.vector_store %arg3[%c0_160, %c0_161], %227 {strides = array<i32>} : memref<16x128xf32, #tpu.memory_space<vmem>>, vector<16x128xf32>,
    return
  }
  func.func @transform_1(%arg0: i32, %arg1: memref<16xi32, #tpu.memory_space<smem>>) -> (i32, i32) {
    %c0_i32 = arith.constant 0 : i32
    %c0_i32_0 = arith.constant 0 : i32
    return %arg0, %c0_i32 : i32, i32
  }
}

</mosaic_0001>

<bundles_post_ra>
// kernel: tpu_custom_call.1
= control target key start
LH: loop header
LB: loop body
LE: loop exit
PB: predicated region body
PF: predicated region fallthrough
CT: control target
= control target key end

     0   :  { %s1426_s0 = inlined_call_operand.hbm [shape: s32[16], index: 0, kind: input, shape index: {}]   ;;  %s1427_s1 = inlined_call_operand.hbm [shape: f32[64,128], index: 1, kind: input, shape index: {}]   ;;  %s1428_s2 = inlined_call_operand.hbm [shape: f32[16,128], index: 2, kind: output, shape index: {}]  }
   0x1   :  { %s619_s11 = scalar_lea.hbm %s1426_s0, 16 }
   0x2   :  { %p620_p0 = scmp.ne.s32.totalorder %s1426_s0, %s619_s11  ;;  %p623_p1 = scmp.lt.u32.totalorder %s619_s11, %s1426_s0 }
   0x4   :  { %p625_p2 = pnand %p623_p1, %p620_p0 }
   0x6   :  { %628 = shalt.err (!%p625_p2)  }
   0x7   :  { %s1041_s16 = smov [#allocation5]  }
   0x8   :  { %8 = dma.hbm_to_smem %s1426_s0, 16, %s1041_s16, [#allocation4] }
   0x9   :  { %1035 = dma.done.wait [#allocation4], 16 }
   0xa   :  { %1036 = vsyncadd [#allocation4], 4294967280 }
   0xb   :  { %10 = sfence }
   0xc   :  { %11 = vsyncpa [#allocation7], 0  ;;  %s15_s19 = sld [smem:[#allocation5]]  ;;  %s1042_s20 = smov [#allocation2]  }
   0xd   :  { %s29_s21 = sshll.u32 %s1042_s20, 4  ;;  %s461_s22 = sld [smem:[#allocation5 + $0x1]]  ;;  %s1088_s21 = int_to_ptr.vmem [resolvable:$true] %s29_s21 }
   0xe   :  { %s1043_s23 = smov [#allocation2 + $0x1]   ;;  %s1090_s25 = sld [smem:[#allocation5 + $0x2]] }
   0xf   :  { %s51_s24 = sshll.u32 %s1043_s23, 4  ;;  %s1044_s26 = smov [#allocation2 + $0x2]   ;;  %s1092_s24 = int_to_ptr.vmem [resolvable:$true] %s51_s24 }
  0x10   :  { %s1094_s27 = sshll.u32 %s1044_s26, 4  ;;  %s1096_s0 = sld [smem:[#allocation5 + $0x3]]  ;;  %s74_s27 = int_to_ptr.vmem [resolvable:$true] %s1094_s27 }
  0x11   :  { %s1105_s8 = scalar_lea.hbm %s1427_s1, 1024 }
  0x12   :  { %p16_p3 = scmp.gt.s32.totalorder %s15_s19, 0  ;;  %p455_p4 = scmp.lt.s32.totalorder %s15_s19, 63 }
  0x13   :  { %p37_p5 = scmp.gt.s32.totalorder %s461_s22, 0  ;;  %p462_p6 = scmp.lt.s32.totalorder %s461_s22, 63 }
  0x14   :  { %s1433_s19 = smov (!%p16_p3, %s15_s19), 0  ;;  %p59_p7 = scmp.gt.s32.totalorder %s1090_s25, 0 }
  0x15   :  { %s1435_s22 = smov (!%p37_p5, %s461_s22), 0  ;;  %s1437_s19 = smov (!%p455_p4, %s1433_s19), 63 }
  0x16   :  { %s1439_s22 = smov (!%p462_p6, %s1435_s22), 63  ;;  %s460_s28 = sshll.u32 %s1437_s19, 4 }
  0x17   :  { %s21_s3 = scalar_lea.hbm %s1427_s1, %s460_s28  ;;  %s467_s4 = sshll.u32 %s1439_s22, 4 }
  0x18   :  { %s629_s5 = scalar_lea.hbm %s21_s3, 16  ;;  %p632_p9 = scmp.lt.u32.totalorder %s21_s3, %s1427_s1 }
  0x19   :  { %p630_p8 = scmp.ne.s32.totalorder %s21_s3, %s629_s5  ;;  %p633_p10 = scmp.lt.u32.totalorder %s1105_s8, %s629_s5 }
  0x1a   :  { %p635_p12 = scmp.lt.u32.totalorder %s629_s5, %s21_s3 }
  0x1b   :  { %p634_p11 = por %p633_p10, %p632_p9 }
  0x1d   :  { %p636_p13 = por %p635_p12, %p634_p11 }
  0x1f   :  { %p637_p0 = pnand %p636_p13, %p630_p8 }
  0x21   :  { %640 = shalt.err (!%p637_p0)  }
  0x22   :  { %s641_s11 = scalar_lea.vmem %s1088_s21, 16  ;;  %s1114_s12 = scalar_lea.vmem %s1088_s21, 256 }
  0x23   :  { %p642_p1 = scmp.ne.s32.totalorder %s1088_s21, %s641_s11  ;;  %p646_p2 = scmp.lt.s32.totalorder %s1088_s21, %s1088_s21 }
  0x24   :  { %p647_p3 = scmp.lt.s32.totalorder %s1114_s12, %s641_s11 }
  0x26   :  { %p648_p4 = por %p647_p3, %p646_p2 }
  0x28   :  { %p649_p5 = pnand %p648_p4, %p642_p1 }
  0x2a   :  { %652 = shalt.err (!%p649_p5)  }
  0x2b   :  { %32 = dma.hbm_to_vmem [thread:$0]  %s21_s3, 16, %s1088_s21, [#allocation3] }
  0x2c   :  { %s42_s15 = scalar_lea.hbm %s1427_s1, %s467_s4  ;;  %p469_p6 = scmp.lt.s32.totalorder %s1090_s25, 63 }
  0x2d   :  { %s653_s16 = scalar_lea.hbm %s42_s15, 16  ;;  %p656_p9 = scmp.lt.u32.totalorder %s42_s15, %s1427_s1 }
  0x2e   :  { %p654_p8 = scmp.ne.s32.totalorder %s42_s15, %s653_s16  ;;  %p657_p10 = scmp.lt.u32.totalorder %s1105_s8, %s653_s16 }
  0x2f   :  { %p659_p12 = scmp.lt.u32.totalorder %s653_s16, %s42_s15 }
  0x30   :  { %p658_p11 = por %p657_p10, %p656_p9 }
  0x32   :  { %p660_p13 = por %p659_p12, %p658_p11 }
  0x34   :  { %p661_p0 = pnand %p660_p13, %p654_p8 }
  0x36   :  { %664 = shalt.err (!%p661_p0)  }
  0x37   :  { %s665_s19 = scalar_lea.vmem %s1092_s24, 16  ;;  %p670_p2 = scmp.lt.s32.totalorder %s1092_s24, %s1088_s21 }
  0x38   :  { %p666_p1 = scmp.ne.s32.totalorder %s1092_s24, %s665_s19  ;;  %p671_p3 = scmp.lt.s32.totalorder %s1114_s12, %s665_s19 }
  0x3a   :  { %p672_p4 = por %p671_p3, %p670_p2 }
  0x3c   :  { %p673_p5 = pnand %p672_p4, %p666_p1 }
  0x3e   :  { %676 = shalt.err (!%p673_p5)  }
  0x3f   :  { %54 = dma.hbm_to_vmem [thread:$0]  %s42_s15, 16, %s1092_s24, [#allocation3] }
  0x40   :  { %s60_s20 = scalar_select %p59_p7, %s1090_s25, 0 }
  0x41   :  { %p81_p8 = scmp.gt.s32.totalorder %s1096_s0, 0  ;;  %p476_p9 = scmp.lt.s32.totalorder %s1096_s0, 63 }
  0x42   :  { %s1441_s20 = smov (!%p469_p6, %s60_s20), 63 }
  0x43   :  { %s82_s22 = scalar_select %p81_p8, %s1096_s0, 0 }
  0x44   :  { %s474_s23 = sshll.u32 %s1441_s20, 4 }
  0x45   :  { %s64_s29 = scalar_lea.hbm %s1427_s1, %s474_s23 }
  0x46   :  { %s677_s30 = scalar_lea.hbm %s64_s29, 16  ;;  %p680_p11 = scmp.lt.u32.totalorder %s64_s29, %s1427_s1 }
  0x47   :  { %p678_p10 = scmp.ne.s32.totalorder %s64_s29, %s677_s30  ;;  %p681_p12 = scmp.lt.u32.totalorder %s1105_s8, %s677_s30 }
  0x48   :  { %p683_p7 = scmp.lt.u32.totalorder %s677_s30, %s64_s29 }
  0x49   :  { %p682_p13 = por %p681_p12, %p680_p11 }
  0x4b   :  { %p684_p0 = por %p683_p7, %p682_p13 }
  0x4d   :  { %p685_p1 = pnand %p684_p0, %p678_p10 }
  0x4f   :  { %688 = shalt.err (!%p685_p1)  }
  0x50   :  { %s689_s24 = scalar_lea.vmem %s74_s27, 16  ;;  %p694_p2 = scmp.lt.s32.totalorder %s74_s27, %s1088_s21 }
  0x51   :  { %p690_p6 = scmp.ne.s32.totalorder %s74_s27, %s689_s24  ;;  %p695_p3 = scmp.lt.s32.totalorder %s1114_s12, %s689_s24 }
  0x53   :  { %p696_p4 = por %p695_p3, %p694_p2 }
  0x55   :  { %p697_p5 = pnand %p696_p4, %p690_p6 }
  0x57   :  { %700 = shalt.err (!%p697_p5)  }
  0x58   :  { %76 = dma.hbm_to_vmem [thread:$0]  %s64_s29, 16, %s74_s27, [#allocation3] }
  0x59   :  { %s1443_s22 = smov (!%p476_p9, %s82_s22), 63  ;;  %s1045_s25 = smov [#allocation2 + $0x3]  }
  0x5a   :  { %s95_s5 = sshll.u32 %s1045_s25, 4  ;;  %s1154_s6 = sld [smem:[#allocation5 + $0x4]]  ;;  %s96_s5 = int_to_ptr.vmem [resolvable:$true] %s95_s5 }
  0x5b   :  { %s481_s7 = sshll.u32 %s1443_s22, 4 }
  0x5c   :  { %s86_s11 = scalar_lea.hbm %s1427_s1, %s481_s7 }
  0x5d   :  { %s701_s13 = scalar_lea.hbm %s86_s11, 16  ;;  %p704_p10 = scmp.lt.u32.totalorder %s86_s11, %s1427_s1 }
  0x5e   :  { %p702_p8 = scmp.ne.s32.totalorder %s86_s11, %s701_s13  ;;  %p705_p11 = scmp.lt.u32.totalorder %s1105_s8, %s701_s13 }
  0x5f   :  { %p707_p13 = scmp.lt.u32.totalorder %s701_s13, %s86_s11 }
  0x60   :  { %p706_p12 = por %p705_p11, %p704_p10 }
  0x62   :  { %p708_p9 = por %p707_p13, %p706_p12 }
  0x64   :  { %p709_p7 = pnand %p708_p9, %p702_p8 }
  0x66   :  { %712 = shalt.err (!%p709_p7)  }
  0x67   :  { %s713_s27 = scalar_lea.vmem %s96_s5, 16  ;;  %p718_p1 = scmp.lt.s32.totalorder %s96_s5, %s1088_s21 }
  0x68   :  { %p714_p0 = scmp.ne.s32.totalorder %s96_s5, %s713_s27  ;;  %p719_p6 = scmp.lt.s32.totalorder %s1114_s12, %s713_s27 }
  0x6a   :  { %p720_p2 = por %p719_p6, %p718_p1 }
  0x6c   :  { %p721_p3 = pnand %p720_p2, %p714_p0 }
  0x6e   :  { %724 = shalt.err (!%p721_p3)  }
  0x6f   :  { %98 = dma.hbm_to_vmem [thread:$0]  %s86_s11, 16, %s96_s5, [#allocation3] }
  0x70   :  { %s1046_s0 = smov [#allocation2 + $0x4]   ;;  %s1165_s17 = sld [smem:[#allocation5 + $0x5]] }
  0x71   :  { %s117_s16 = sshll.u32 %s1046_s0, 4  ;;  %p103_p4 = scmp.gt.s32.totalorder %s1154_s6, 0  ;;  %s1167_s16 = int_to_ptr.vmem [resolvable:$true] %s117_s16 }
  0x72   :  { %p483_p5 = scmp.lt.s32.totalorder %s1154_s6, 63  ;;  %s1047_s18 = smov [#allocation2 + $0x5]  }
  0x73   :  { %s139_s19 = sshll.u32 %s1047_s18, 4  ;;  %s1171_s20 = sld [smem:[#allocation5 + $0x6]]  ;;  %s1174_s19 = int_to_ptr.vmem [resolvable:$true] %s139_s19 }
  0x74   :  { %s1445_s6 = smov (!%p103_p4, %s1154_s6), 0  ;;  %s1048_s23 = smov [#allocation2 + $0x6]  }
  0x75   :  { %s1447_s6 = smov (!%p483_p5, %s1445_s6), 63  ;;  %s161_s26 = sshll.u32 %s1048_s23, 4  ;;  %s1201_s26 = int_to_ptr.vmem [resolvable:$true] %s161_s26 }
  0x76   :  { %p125_p8 = scmp.gt.s32.totalorder %s1165_s17, 0  ;;  %s488_s22 = sshll.u32 %s1447_s6, 4 }
  0x77   :  { %s108_s30 = scalar_lea.hbm %s1427_s1, %s488_s22 }
  0x78   :  { %s725_s3 = scalar_lea.hbm %s108_s30, 16  ;;  %p728_p13 = scmp.lt.u32.totalorder %s108_s30, %s1427_s1 }
  0x79   :  { %p147_p11 = scmp.gt.s32.totalorder %s1171_s20, 0  ;;  %p726_p12 = scmp.ne.s32.totalorder %s108_s30, %s725_s3 }
  0x7a   :  { %p729_p9 = scmp.lt.u32.totalorder %s1105_s8, %s725_s3  ;;  %p731_p0 = scmp.lt.u32.totalorder %s725_s3, %s108_s30 }
  0x7c   :  { %p730_p7 = por %p729_p9, %p728_p13 }
  0x7e   :  { %p732_p1 = por %p731_p0, %p730_p7 }
  0x80   :  { %p733_p6 = pnand %p732_p1, %p726_p12 }
  0x82   :  { %736 = shalt.err (!%p733_p6)  }
  0x83   :  { %s737_s25 = scalar_lea.vmem %s1167_s16, 16  ;;  %p742_p3 = scmp.lt.s32.totalorder %s1167_s16, %s1088_s21 }
  0x84   :  { %p738_p2 = scmp.ne.s32.totalorder %s1167_s16, %s737_s25  ;;  %p743_p4 = scmp.lt.s32.totalorder %s1114_s12, %s737_s25 }
  0x86   :  { %p744_p5 = por %p743_p4, %p742_p3 }
  0x88   :  { %p745_p10 = pnand %p744_p5, %p738_p2 }
  0x8a   :  { %748 = shalt.err (!%p745_p10)  }
  0x8b   :  { %120 = dma.hbm_to_vmem [thread:$0]  %s108_s30, 16, %s1167_s16, [#allocation3] }
  0x8c   :  { %s126_s5 = scalar_select %p125_p8, %s1165_s17, 0 }
  0x8d   :  { %s148_s6 = scalar_select %p147_p11, %s1171_s20, 0 }
  0x8e   :  { %p1429_p12 = scmp.lt.s32.totalorder %s1165_s17, 63  ;;  %p497_p13 = scmp.lt.s32.totalorder %s1171_s20, 63 }
  0x8f   :  { %s1203_s9 = sld [smem:[#allocation5 + $0x7]] }
  0x90   :  { %s1449_s5 = smov (!%p1429_p12, %s126_s5), 63 }
  0x91   :  { %s495_s7 = sshll.u32 %s1449_s5, 4 }
  0x92   :  { %s130_s13 = scalar_lea.hbm %s1427_s1, %s495_s7 }
  0x93   :  { %s749_s14 = scalar_lea.hbm %s130_s13, 16  ;;  %p752_p8 = scmp.lt.u32.totalorder %s130_s13, %s1427_s1 }
  0x94   :  { %p750_p10 = scmp.ne.s32.totalorder %s130_s13, %s749_s14  ;;  %p753_p9 = scmp.lt.u32.totalorder %s1105_s8, %s749_s14 }
  0x95   :  { %p755_p7 = scmp.lt.u32.totalorder %s749_s14, %s130_s13 }
  0x96   :  { %p754_p11 = por %p753_p9, %p752_p8 }
  0x98   :  { %p756_p0 = por %p755_p7, %p754_p11 }
  0x9a   :  { %p757_p1 = pnand %p756_p0, %p750_p10 }
  0x9c   :  { %760 = shalt.err (!%p757_p1)  }
  0x9d   :  { %s761_s0 = scalar_lea.vmem %s1174_s19, 16  ;;  %p766_p2 = scmp.lt.s32.totalorder %s1174_s19, %s1088_s21 }
  0x9e   :  { %p762_p6 = scmp.ne.s32.totalorder %s1174_s19, %s761_s0  ;;  %p767_p3 = scmp.lt.s32.totalorder %s1114_s12, %s761_s0 }
  0xa0   :  { %p768_p4 = por %p767_p3, %p766_p2 }
  0xa2   :  { %p769_p5 = pnand %p768_p4, %p762_p6 }
  0xa4   :  { %772 = shalt.err (!%p769_p5)  }
  0xa5   :  { %142 = dma.hbm_to_vmem [thread:$0]  %s130_s13, 16, %s1174_s19, [#allocation3] }
  0xa6   :  { %s1451_s6 = smov (!%p497_p13, %s148_s6), 63  ;;  %s1049_s16 = smov [#allocation2 + $0x7]  }
  0xa7   :  { %s183_s17 = sshll.u32 %s1049_s16, 4  ;;  %s1220_s18 = sld [smem:[#allocation5 + $0x8]]  ;;  %s1222_s17 = int_to_ptr.vmem [resolvable:$true] %s183_s17 }
  0xa8   :  { %s502_s22 = sshll.u32 %s1451_s6, 4  ;;  %p169_p12 = scmp.gt.s32.totalorder %s1203_s9, 0 }
  0xa9   :  { %s152_s29 = scalar_lea.hbm %s1427_s1, %s502_s22 }
  0xaa   :  { %s773_s30 = scalar_lea.hbm %s152_s29, 16  ;;  %p776_p8 = scmp.lt.u32.totalorder %s152_s29, %s1427_s1 }
  0xab   :  { %p774_p10 = scmp.ne.s32.totalorder %s152_s29, %s773_s30  ;;  %p777_p9 = scmp.lt.u32.totalorder %s1105_s8, %s773_s30 }
  0xac   :  { %p779_p11 = scmp.lt.u32.totalorder %s773_s30, %s152_s29 }
  0xad   :  { %p778_p13 = por %p777_p9, %p776_p8 }
  0xaf   :  { %p780_p7 = por %p779_p11, %p778_p13 }
  0xb1   :  { %p781_p0 = pnand %p780_p7, %p774_p10 }
  0xb3   :  { %784 = shalt.err (!%p781_p0)  }
  0xb4   :  { %s785_s19 = scalar_lea.vmem %s1201_s26, 16  ;;  %p790_p6 = scmp.lt.s32.totalorder %s1201_s26, %s1088_s21 }
  0xb5   :  { %p786_p1 = scmp.ne.s32.totalorder %s1201_s26, %s785_s19  ;;  %p791_p2 = scmp.lt.s32.totalorder %s1114_s12, %s785_s19 }
  0xb7   :  { %p792_p3 = por %p791_p2, %p790_p6 }
  0xb9   :  { %p793_p4 = pnand %p792_p3, %p786_p1 }
  0xbb   :  { %796 = shalt.err (!%p793_p4)  }
  0xbc   :  { %164 = dma.hbm_to_vmem [thread:$0]  %s152_s29, 16, %s1201_s26, [#allocation3] }
  0xbd   :  { %s170_s20 = scalar_select %p169_p12, %s1203_s9, 0 }
  0xbe   :  { %p504_p5 = scmp.lt.s32.totalorder %s1203_s9, 63  ;;  %p191_p10 = scmp.gt.s32.totalorder %s1220_s18, 0 }
  0xbf   :  { %p511_p8 = scmp.lt.s32.totalorder %s1220_s18, 63  ;;  %s1050_s5 = smov [#allocation2 + $0x8]  }
  0xc0   :  { %s1453_s20 = smov (!%p504_p5, %s170_s20), 63  ;;  %s205_s6 = sshll.u32 %s1050_s5, 4  ;;  %s1248_s6 = int_to_ptr.vmem [resolvable:$true] %s205_s6 }
  0xc1   :  { %s192_s24 = scalar_select %p191_p10, %s1220_s18, 0 }
  0xc2   :  { %s509_s25 = sshll.u32 %s1453_s20, 4 }
  0xc3   :  { %s174_s11 = scalar_lea.hbm %s1427_s1, %s509_s25 }
  0xc4   :  { %s797_s13 = scalar_lea.hbm %s174_s11, 16  ;;  %p800_p12 = scmp.lt.u32.totalorder %s174_s11, %s1427_s1 }
  0xc5   :  { %p798_p9 = scmp.ne.s32.totalorder %s174_s11, %s797_s13  ;;  %p801_p13 = scmp.lt.u32.totalorder %s1105_s8, %s797_s13 }
  0xc6   :  { %p803_p7 = scmp.lt.u32.totalorder %s797_s13, %s174_s11 }
  0xc7   :  { %p802_p11 = por %p801_p13, %p800_p12 }
  0xc9   :  { %p804_p0 = por %p803_p7, %p802_p11 }
  0xcb   :  { %p805_p1 = pnand %p804_p0, %p798_p9 }
  0xcd   :  { %808 = shalt.err (!%p805_p1)  }
  0xce   :  { %s809_s9 = scalar_lea.vmem %s1222_s17, 16  ;;  %p814_p2 = scmp.lt.s32.totalorder %s1222_s17, %s1088_s21 }
  0xcf   :  { %p810_p6 = scmp.ne.s32.totalorder %s1222_s17, %s809_s9  ;;  %p815_p3 = scmp.lt.s32.totalorder %s1114_s12, %s809_s9 }
  0xd1   :  { %p816_p4 = por %p815_p3, %p814_p2 }
  0xd3   :  { %p817_p5 = pnand %p816_p4, %p810_p6 }
  0xd5   :  { %820 = shalt.err (!%p817_p5)  }
  0xd6   :  { %186 = dma.hbm_to_vmem [thread:$0]  %s174_s11, 16, %s1222_s17, [#allocation3] }
  0xd7   :  { %s1455_s24 = smov (!%p511_p8, %s192_s24), 63  ;;  %s1262_s15 = sld [smem:[#allocation5 + $0x9]] }
  0xd8   :  { %s516_s27 = sshll.u32 %s1455_s24, 4  ;;  %s1051_s0 = smov [#allocation2 + $0x9]  }
  0xd9   :  { %s227_s16 = sshll.u32 %s1051_s0, 4  ;;  %s196_s28 = scalar_lea.hbm %s1427_s1, %s516_s27  ;;  %s1267_s16 = int_to_ptr.vmem [resolvable:$true] %s227_s16 }
  0xda   :  { %s821_s29 = scalar_lea.hbm %s196_s28, 16  ;;  %p824_p9 = scmp.lt.u32.totalorder %s196_s28, %s1427_s1 }
  0xdb   :  { %p822_p10 = scmp.ne.s32.totalorder %s196_s28, %s821_s29  ;;  %p825_p12 = scmp.lt.u32.totalorder %s1105_s8, %s821_s29 }
  0xdc   :  { %p827_p8 = scmp.lt.u32.totalorder %s821_s29, %s196_s28 }
  0xdd   :  { %p826_p13 = por %p825_p12, %p824_p9 }
  0xdf   :  { %p828_p11 = por %p827_p8, %p826_p13 }
  0xe1   :  { %p829_p7 = pnand %p828_p11, %p822_p10 }
  0xe3   :  { %832 = shalt.err (!%p829_p7)  }
  0xe4   :  { %s833_s17 = scalar_lea.vmem %s1248_s6, 16  ;;  %p838_p1 = scmp.lt.s32.totalorder %s1248_s6, %s1088_s21 }
  0xe5   :  { %p834_p0 = scmp.ne.s32.totalorder %s1248_s6, %s833_s17  ;;  %p839_p6 = scmp.lt.s32.totalorder %s1114_s12, %s833_s17 }
  0xe7   :  { %p840_p2 = por %p839_p6, %p838_p1 }
  0xe9   :  { %p841_p3 = pnand %p840_p2, %p834_p0 }
  0xeb   :  { %844 = shalt.err (!%p841_p3)  }
  0xec   :  { %208 = dma.hbm_to_vmem [thread:$0]  %s196_s28, 16, %s1248_s6, [#allocation3] }
  0xed   :  { %s1279_s18 = sld [smem:[#allocation5 + $0xa]]  ;;  %s1052_s4 = smov [#allocation2 + $0xa]  }
  0xee   :  { %s249_s19 = sshll.u32 %s1052_s4, 4  ;;  %s1281_s20 = sld [smem:[#allocation5 + $0xb]]  ;;  %s1285_s19 = int_to_ptr.vmem [resolvable:$true] %s249_s19 }
  0xef   :  { %p213_p4 = scmp.gt.s32.totalorder %s1262_s15, 0  ;;  %p518_p5 = scmp.lt.s32.totalorder %s1262_s15, 63 }
  0xf0   :  { %s1053_s24 = smov [#allocation2 + $0xb]   ;;  %s1290_s5 = sld [smem:[#allocation5 + $0xc]] }
  0xf1   :  { %s1457_s15 = smov (!%p213_p4, %s1262_s15), 0  ;;  %s1288_s25 = sshll.u32 %s1053_s24, 4  ;;  %s1320_s25 = int_to_ptr.vmem [resolvable:$true] %s1288_s25 }
  0xf2   :  { %s1459_s15 = smov (!%p518_p5, %s1457_s15), 63 }
  0xf3   :  { %p235_p10 = scmp.gt.s32.totalorder %s1279_s18, 0  ;;  %s523_s6 = sshll.u32 %s1459_s15, 4 }
  0xf4   :  { %p257_p12 = scmp.gt.s32.totalorder %s1281_s20, 0  ;;  %s218_s11 = scalar_lea.hbm %s1427_s1, %s523_s6 }
  0xf5   :  { %s845_s13 = scalar_lea.hbm %s218_s11, 16  ;;  %p848_p11 = scmp.lt.u32.totalorder %s218_s11, %s1427_s1 }
  0xf6   :  { %p846_p8 = scmp.ne.s32.totalorder %s218_s11, %s845_s13  ;;  %p849_p7 = scmp.lt.u32.totalorder %s1105_s8, %s845_s13 }
  0xf7   :  { %p851_p1 = scmp.lt.u32.totalorder %s845_s13, %s218_s11 }
  0xf8   :  { %p850_p0 = por %p849_p7, %p848_p11 }
  0xfa   :  { %p852_p6 = por %p851_p1, %p850_p0 }
  0xfc   :  { %p853_p2 = pnand %p852_p6, %p846_p8 }
  0xfe   :  { %856 = shalt.err (!%p853_p2)  }
  0xff   :  { %s857_s9 = scalar_lea.vmem %s1267_s16, 16  ;;  %p862_p4 = scmp.lt.s32.totalorder %s1267_s16, %s1088_s21 }
 0x100   :  { %p858_p3 = scmp.ne.s32.totalorder %s1267_s16, %s857_s9  ;;  %p863_p5 = scmp.lt.s32.totalorder %s1114_s12, %s857_s9 }
 0x102   :  { %p864_p13 = por %p863_p5, %p862_p4 }
 0x104   :  { %p865_p9 = pnand %p864_p13, %p858_p3 }
 0x106   :  { %868 = shalt.err (!%p865_p9)  }
 0x107   :  { %230 = dma.hbm_to_vmem [thread:$0]  %s218_s11, 16, %s1267_s16, [#allocation3] }
 0x108   :  { %s236_s15 = scalar_select %p235_p10, %s1279_s18, 0 }
 0x109   :  { %s258_s27 = scalar_select %p257_p12, %s1281_s20, 0 }
 0x10a   :  { %p1430_p8 = scmp.lt.s32.totalorder %s1279_s18, 63  ;;  %p1431_p11 = scmp.lt.s32.totalorder %s1281_s20, 63 }
 0x10c   :  { %s1461_s15 = smov (!%p1430_p8, %s236_s15), 63  ;;  %s1463_s27 = smov (!%p1431_p11, %s258_s27), 63 }
 0x10d   :  { %s530_s0 = sshll.u32 %s1461_s15, 4  ;;  %s537_s29 = sshll.u32 %s1463_s27, 4 }
 0x10e   :  { %s240_s28 = scalar_lea.hbm %s1427_s1, %s530_s0 }
 0x10f   :  { %s869_s30 = scalar_lea.hbm %s240_s28, 16  ;;  %p872_p10 = scmp.lt.u32.totalorder %s240_s28, %s1427_s1 }
 0x110   :  { %p870_p9 = scmp.ne.s32.totalorder %s240_s28, %s869_s30  ;;  %p873_p13 = scmp.lt.u32.totalorder %s1105_s8, %s869_s30 }
 0x111   :  { %p875_p7 = scmp.lt.u32.totalorder %s869_s30, %s240_s28 }
 0x112   :  { %p874_p12 = por %p873_p13, %p872_p10 }
 0x114   :  { %p876_p0 = por %p875_p7, %p874_p12 }
 0x116   :  { %p877_p1 = pnand %p876_p0, %p870_p9 }
 0x118   :  { %880 = shalt.err (!%p877_p1)  }
 0x119   :  { %s881_s17 = scalar_lea.vmem %s1285_s19, 16  ;;  %p886_p2 = scmp.lt.s32.totalorder %s1285_s19, %s1088_s21 }
 0x11a   :  { %p882_p6 = scmp.ne.s32.totalorder %s1285_s19, %s881_s17  ;;  %p887_p3 = scmp.lt.s32.totalorder %s1114_s12, %s881_s17 }
 0x11c   :  { %p888_p4 = por %p887_p3, %p886_p2 }
 0x11e   :  { %p889_p5 = pnand %p888_p4, %p882_p6 }
 0x120   :  { %892 = shalt.err (!%p889_p5)  }
 0x121   :  { %252 = dma.hbm_to_vmem [thread:$0]  %s240_s28, 16, %s1285_s19, [#allocation3] }
 0x122   :  { %s262_s20 = scalar_lea.hbm %s1427_s1, %s537_s29  ;;  %p279_p8 = scmp.gt.s32.totalorder %s1290_s5, 0 }
 0x123   :  { %s893_s24 = scalar_lea.hbm %s262_s20, 16  ;;  %p896_p9 = scmp.lt.u32.totalorder %s262_s20, %s1427_s1 }
 0x124   :  { %p894_p11 = scmp.ne.s32.totalorder %s262_s20, %s893_s24  ;;  %p897_p10 = scmp.lt.u32.totalorder %s1105_s8, %s893_s24 }
 0x125   :  { %p899_p12 = scmp.lt.u32.totalorder %s893_s24, %s262_s20 }
 0x126   :  { %p898_p13 = por %p897_p10, %p896_p9 }
 0x128   :  { %p900_p7 = por %p899_p12, %p898_p13 }
 0x12a   :  { %p901_p0 = pnand %p900_p7, %p894_p11 }
 0x12c   :  { %904 = shalt.err (!%p901_p0)  }
 0x12d   :  { %s905_s19 = scalar_lea.vmem %s1320_s25, 16  ;;  %p910_p6 = scmp.lt.s32.totalorder %s1320_s25, %s1088_s21 }
 0x12e   :  { %p906_p1 = scmp.ne.s32.totalorder %s1320_s25, %s905_s19  ;;  %p911_p2 = scmp.lt.s32.totalorder %s1114_s12, %s905_s19 }
 0x130   :  { %p912_p3 = por %p911_p2, %p910_p6 }
 0x132   :  { %p913_p4 = pnand %p912_p3, %p906_p1 }
 0x134   :  { %916 = shalt.err (!%p913_p4)  }
 0x135   :  { %274 = dma.hbm_to_vmem [thread:$0]  %s262_s20, 16, %s1320_s25, [#allocation3] }
 0x136   :  { %s280_s10 = scalar_select %p279_p8, %s1290_s5, 0 }
 0x137   :  { %p539_p5 = scmp.lt.s32.totalorder %s1290_s5, 63  ;;  %s1054_s11 = smov [#allocation2 + $0xc]  }
 0x138   :  { %s293_s13 = sshll.u32 %s1054_s11, 4  ;;  %s1353_s14 = sld [smem:[#allocation5 + $0xd]]  ;;  %s294_s13 = int_to_ptr.vmem [resolvable:$true] %s293_s13 }
 0x139   :  { %s1465_s10 = smov (!%p539_p5, %s280_s10), 63  ;;  %s1055_s0 = smov [#allocation2 + $0xd]  }
 0x13a   :  { %s544_s26 = sshll.u32 %s1465_s10, 4  ;;  %s315_s22 = sshll.u32 %s1055_s0, 4  ;;  %s316_s22 = int_to_ptr.vmem [resolvable:$true] %s315_s22 }
 0x13b   :  { %s284_s27 = scalar_lea.hbm %s1427_s1, %s544_s26 }
 0x13c   :  { %s917_s23 = scalar_lea.hbm %s284_s27, 16  ;;  %p920_p8 = scmp.lt.u32.totalorder %s284_s27, %s1427_s1 }
 0x13d   :  { %p918_p11 = scmp.ne.s32.totalorder %s284_s27, %s917_s23  ;;  %p921_p9 = scmp.lt.u32.totalorder %s1105_s8, %s917_s23 }
 0x13e   :  { %p923_p13 = scmp.lt.u32.totalorder %s917_s23, %s284_s27 }
 0x13f   :  { %p922_p10 = por %p921_p9, %p920_p8 }
 0x141   :  { %p924_p12 = por %p923_p13, %p922_p10 }
 0x143   :  { %p925_p7 = pnand %p924_p12, %p918_p11 }
 0x145   :  { %928 = shalt.err (!%p925_p7)  }
 0x146   :  { %s929_s5 = scalar_lea.vmem %s294_s13, 16  ;;  %p934_p1 = scmp.lt.s32.totalorder %s294_s13, %s1088_s21 }
 0x147   :  { %p930_p0 = scmp.ne.s32.totalorder %s294_s13, %s929_s5  ;;  %p935_p6 = scmp.lt.s32.totalorder %s1114_s12, %s929_s5 }
 0x149   :  { %p936_p2 = por %p935_p6, %p934_p1 }
 0x14b   :  { %p937_p3 = pnand %p936_p2, %p930_p0 }
 0x14d   :  { %940 = shalt.err (!%p937_p3)  }
 0x14e   :  { %296 = dma.hbm_to_vmem [thread:$0]  %s284_s27, 16, %s294_s13, [#allocation3] }
 0x14f   :  { %p301_p4 = scmp.gt.s32.totalorder %s1353_s14, 0  ;;  %p546_p5 = scmp.lt.s32.totalorder %s1353_s14, 63 }
 0x150   :  { %s1366_s29 = sld [smem:[#allocation5 + $0xe]]  ;;  %s1056_s30 = smov [#allocation2 + $0xe]  }
 0x151   :  { %s1467_s14 = smov (!%p301_p4, %s1353_s14), 0  ;;  %s337_s3 = sshll.u32 %s1056_s30, 4  ;;  %s1371_s3 = int_to_ptr.vmem [resolvable:$true] %s337_s3 }
 0x152   :  { %s1369_s16 = sld [smem:[#allocation5 + $0xf]]  ;;  %s1469_s14 = smov (!%p546_p5, %s1467_s14), 63 }
 0x153   :  { %s551_s17 = sshll.u32 %s1469_s14, 4 }
 0x154   :  { %s306_s20 = scalar_lea.hbm %s1427_s1, %s551_s17 }
 0x155   :  { %s941_s24 = scalar_lea.hbm %s306_s20, 16  ;;  %p944_p9 = scmp.lt.u32.totalorder %s306_s20, %s1427_s1 }
 0x156   :  { %p323_p11 = scmp.gt.s32.totalorder %s1366_s29, 0  ;;  %p942_p8 = scmp.ne.s32.totalorder %s306_s20, %s941_s24 }
 0x157   :  { %p945_p10 = scmp.lt.u32.totalorder %s1105_s8, %s941_s24  ;;  %p947_p12 = scmp.lt.u32.totalorder %s941_s24, %s306_s20 }
 0x159   :  { %p946_p13 = por %p945_p10, %p944_p9 }
 0x15b   :  { %p948_p7 = por %p947_p12, %p946_p13 }
 0x15d   :  { %p949_p0 = pnand %p948_p7, %p942_p8 }
 0x15f   :  { %952 = shalt.err (!%p949_p0)  }
 0x160   :  { %s953_s19 = scalar_lea.vmem %s316_s22, 16  ;;  %p958_p6 = scmp.lt.s32.totalorder %s316_s22, %s1088_s21 }
 0x161   :  { %p954_p1 = scmp.ne.s32.totalorder %s316_s22, %s953_s19  ;;  %p959_p2 = scmp.lt.s32.totalorder %s1114_s12, %s953_s19 }
 0x163   :  { %p960_p3 = por %p959_p2, %p958_p6 }
 0x165   :  { %p961_p4 = pnand %p960_p3, %p954_p1 }
 0x167   :  { %964 = shalt.err (!%p961_p4)  }
 0x168   :  { %318 = dma.hbm_to_vmem [thread:$0]  %s306_s20, 16, %s316_s22, [#allocation3] }
 0x169   :  { %s324_s10 = scalar_select %p323_p11, %s1366_s29, 0 }
 0x16a   :  { %p553_p5 = scmp.lt.s32.totalorder %s1366_s29, 63  ;;  %p345_p8 = scmp.gt.s32.totalorder %s1369_s16, 0 }
 0x16b   :  { %p560_p9 = scmp.lt.s32.totalorder %s1369_s16, 63  ;;  %s1057_s15 = smov [#allocation2 + $0xf]  }
 0x16c   :  { %s1471_s10 = smov (!%p553_p5, %s324_s10), 63  ;;  %s359_s27 = sshll.u32 %s1057_s15, 4  ;;  %s360_s27 = int_to_ptr.vmem [resolvable:$true] %s359_s27 }
 0x16d   :  { %s346_s11 = scalar_select %p345_p8, %s1369_s16, 0 }
 0x16e   :  { %s558_s13 = sshll.u32 %s1471_s10, 4 }
 0x16f   :  { %s328_s9 = scalar_lea.hbm %s1427_s1, %s558_s13 }
 0x170   :  { %s965_s0 = scalar_lea.hbm %s328_s9, 16  ;;  %p968_p13 = scmp.lt.u32.totalorder %s328_s9, %s1427_s1 }
 0x171   :  { %p966_p10 = scmp.ne.s32.totalorder %s328_s9, %s965_s0  ;;  %p969_p12 = scmp.lt.u32.totalorder %s1105_s8, %s965_s0 }
 0x172   :  { %p971_p7 = scmp.lt.u32.totalorder %s965_s0, %s328_s9 }
 0x173   :  { %p970_p11 = por %p969_p12, %p968_p13 }
 0x175   :  { %p972_p0 = por %p971_p7, %p970_p11 }
 0x177   :  { %p973_p1 = pnand %p972_p0, %p966_p10 }
 0x179   :  { %976 = shalt.err (!%p973_p1)  }
 0x17a   :  { %s977_s28 = scalar_lea.vmem %s1371_s3, 16  ;;  %p982_p2 = scmp.lt.s32.totalorder %s1371_s3, %s1088_s21 }
 0x17b   :  { %p978_p6 = scmp.ne.s32.totalorder %s1371_s3, %s977_s28  ;;  %p983_p3 = scmp.lt.s32.totalorder %s1114_s12, %s977_s28 }
 0x17d   :  { %p984_p4 = por %p983_p3, %p982_p2 }
 0x17f   :  { %p985_p5 = pnand %p984_p4, %p978_p6 }
 0x181   :  { %988 = shalt.err (!%p985_p5)  }
 0x182   :  { %340 = dma.hbm_to_vmem [thread:$0]  %s328_s9, 16, %s1371_s3, [#allocation3] }
 0x183   :  { %s1473_s11 = smov (!%p560_p9, %s346_s11), 63 }
 0x184   :  { %s565_s25 = sshll.u32 %s1473_s11, 4 }
 0x185   :  { %s350_s30 = scalar_lea.hbm %s1427_s1, %s565_s25 }
 0x186   :  { %s989_s17 = scalar_lea.hbm %s350_s30, 16  ;;  %p992_p10 = scmp.lt.u32.totalorder %s350_s30, %s1427_s1 }
 0x187   :  { %p990_p8 = scmp.ne.s32.totalorder %s350_s30, %s989_s17  ;;  %p993_p13 = scmp.lt.u32.totalorder %s1105_s8, %s989_s17 }
 0x188   :  { %p995_p11 = scmp.lt.u32.totalorder %s989_s17, %s350_s30 }
 0x189   :  { %p994_p12 = por %p993_p13, %p992_p10 }
 0x18b   :  { %p996_p7 = por %p995_p11, %p994_p12 }
 0x18d   :  { %p997_p0 = pnand %p996_p7, %p990_p8 }
 0x18f   :  { %1000 = shalt.err (!%p997_p0)  }
 0x190   :  { %s1001_s3 = scalar_lea.vmem %s360_s27, 16  ;;  %p1006_p1 = scmp.lt.s32.totalorder %s360_s27, %s1088_s21 }
 0x191   :  { %p1002_p9 = scmp.ne.s32.totalorder %s360_s27, %s1001_s3  ;;  %p1007_p6 = scmp.lt.s32.totalorder %s1114_s12, %s1001_s3 }
 0x193   :  { %p1008_p2 = por %p1007_p6, %p1006_p1 }
 0x195   :  { %p1009_p3 = pnand %p1008_p2, %p1002_p9 }
 0x197   :  { %1012 = shalt.err (!%p1009_p3)  }
 0x198   :  { %362 = dma.hbm_to_vmem [thread:$0]  %s350_s30, 16, %s360_s27, [#allocation3] }
 0x199   :  { %1037 = dma.done.wait [#allocation3], 256 }
 0x19a   :  { %1038 = vsyncadd [#allocation3], 4294967040  ;;  %s1058_s16 = smov [#allocation6]   ;;  %v395_v0 = vld [vmem:[#allocation2] sm:$0xff]  ;;  %v396_v1 = vld [vmem:[#allocation2 + $0x8] sm:$0xff] }
 0x19b   :  { %s406_s1 = sshll.u32 %s1058_s16, 4  ;;  %v397_v2 = vmul.f32 11.313708, %v395_v0  ;;  %v398_v3 = vmul.f32 11.313708, %v396_v1  ;;  %s407_s1 = int_to_ptr.vmem [resolvable:$true] %s406_s1 }
 0x19c   :  { %s1013_s8 = scalar_lea.vmem %s407_s1, 256  ;;  %p1018_p5 = scmp.lt.s32.totalorder %s407_s1, %s407_s1 }
 0x19d   :  { %399 = vst [vmem:[#allocation6] sm:$0xff] %v397_v2  ;;  %400 = vst [vmem:[#allocation6 + $0x8] sm:$0xff] %v398_v3  ;;  %p1014_p4 = scmp.ne.s32.totalorder %s407_s1, %s1013_s8  ;;  %p1019_p8 = scmp.lt.s32.totalorder %s1013_s8, %s1013_s8 }
 0x19f   :  { %p1020_p10 = por %p1019_p8, %p1018_p5 }
 0x1a1   :  { %p1021_p13 = pnand %p1020_p10, %p1014_p4 }
 0x1a3   :  { %1024 = shalt.err (!%p1021_p13)
}
 0x1a4   :  { %s1025_s20 = scalar_lea.hbm %s1428_s2, 256 }
 0x1a5   :  { %p1026_p12 = scmp.ne.s32.totalorder %s1428_s2, %s1025_s20  ;;  %p1029_p11 = scmp.lt.u32.totalorder %s1025_s20, %s1428_s2 }
 0x1a7   :  { %p1031_p7 = pnand %p1029_p11, %p1026_p12 }
 0x1a9   :  { %1034 = shalt.err (!%p1031_p7)
}
 0x1aa   :  { %s1059_s10 = smov 128   ;;  %s1060_s11 = smov 8  }
 0x1ab   :  { %412 = dma.vmem_to_hbm [thread:$0]  %s407_s1, 256, %s1428_s2, [#allocation7], %s1059_s10, %s1059_s10, %s1060_s11  }
 0x1ac   :  { %1039 = dma.done.wait [#allocation7], 256  }
 0x1ad   :  { %1040 = vsyncadd [#allocation7], 4294967040 }
 0x1ae   :  { %416 = vsyncpa [#allocation7], 1 }
 0x1af   :  { %417 = vsyncmov [#allocation3] }
 0x1b2   :  { %s418_s26 = vpop.sfrf %417 }
 0x1b3   :  { %p566_p0 = scmp.ne.s32.totalorder %s418_s26, 0 }
 0x1b5   :  { %422 = shalt.err (%p566_p0)  }

</bundles_post_ra>
